<compile_context>
chip_gen: v7x
topology: tpu7x:2x2x1
jax: 0.10.0
libtpu: 0.0.40
codegen_flags: <defaults>
</compile_context>

<pallas_src>
import functools
import math

import jax
import jax.numpy as jnp
from jax.experimental import pallas as pl
from jax.experimental.pallas import tpu as pltpu

_VMEM_LIMIT = 48 * 1024 * 1024   # generous scoped-VMEM cap; < v7x 64 MiB physical


def _pick_tile(dim, cap, align):
    """Largest `align`-aligned divisor of `dim` <= cap; else the full dim
    (full-extent blocks are always legal w.r.t. the (8,128) rule)."""
    if dim <= cap:
        return dim
    t = (cap // align) * align
    while t >= align:
        if dim % t == 0:
            return t
        t -= align
    return dim


def _largest_divisor(n, cap):
    d = min(n, cap)
    while n % d:
        d -= 1
    return d


# ----------------------------------------------------------------------------
# Tiled linear:  (M, K) @ (K, Nout) [+ b]  — bf16 MXU inputs, f32 K-accumulator
# ----------------------------------------------------------------------------
def _linear_kernel(*refs, has_bias):
    if has_bias:
        x_ref, w_ref, b_ref, o_ref, acc_ref = refs
    else:
        x_ref, w_ref, o_ref, acc_ref = refs
        b_ref = None

    @pl.when(pl.program_id(2) == 0)
    def _():
        acc_ref[...] = jnp.zeros_like(acc_ref)

    acc_ref[...] += jnp.dot(x_ref[...].astype(jnp.bfloat16),
                            w_ref[...].astype(jnp.bfloat16),
                            preferred_element_type=jnp.float32)

    @pl.when(pl.program_id(2) == pl.num_programs(2) - 1)
    def _():
        r = acc_ref[...]
        if b_ref is not None:
            r = r + b_ref[...]
        o_ref[...] = r.astype(o_ref.dtype)


def linear(x, w, b=None):
    """(M, K) @ (K, Nout) [+ (1, Nout)] -> (M, Nout) f32, tiled & pipelined."""
    M, K = x.shape
    _, Nout = w.shape
    tm = _pick_tile(M, 256, 8)
    tn = _pick_tile(Nout, 512, 128)
    tk = _pick_tile(K, 512, 128)

    in_specs = [pl.BlockSpec((tm, tk), lambda i, j, k: (i, k)),
                pl.BlockSpec((tk, tn), lambda i, j, k: (k, j))]
    args = [x, w]
    if b is not None:
        in_specs.append(pl.BlockSpec((1, tn), lambda i, j, k: (0, j)))
        args.append(b)

    cost = pl.CostEstimate(
        flops=2 * M * K * Nout, transcendentals=0,
        bytes_accessed=4 * M * K + 2 * K * Nout + 4 * M * Nout)

    return pl.pallas_call(
        functools.partial(_linear_kernel, has_bias=b is not None),
        out_shape=jax.ShapeDtypeStruct((M, Nout), jnp.float32),
        grid=(M // tm, Nout // tn, K // tk),
        in_specs=in_specs,
        out_specs=pl.BlockSpec((tm, tn), lambda i, j, k: (i, j)),
        scratch_shapes=[pltpu.VMEM((tm, tn), jnp.float32)],
        compiler_params=pltpu.CompilerParams(
            dimension_semantics=("parallel", "parallel", "arbitrary"),
            vmem_limit_bytes=_VMEM_LIMIT),
        cost_estimate=cost,
    )(*args)


# ----------------------------------------------------------------------------
# ViG block kernel (Grapher + FFN + fused inter-block GELU / BN-eval scale)
# ----------------------------------------------------------------------------
def block_kernel(x_ref, wfc1, bfc1, wmr, bmr, wff1, bff1, wff2, bff2, o_ref,
                 *, n_nodes, k_nn, bn_scale):
    """One ViG block for Bt images at once.  x_ref: (Bt*N, C) node features.

    KNN is computed from fc1 features; max-relative aggregation
    max_{j in knn(i)} (h_j - h_i) is built with an iterative argmin + one-hot
    matmul gather (no TPU gather needed).
    # TODO(synk): KNN includes the self node (distance 0) with agg init 0; if
    # the reference DenseDilatedKnnGraph excludes self-loops the neighbor set
    # differs by one.
    """
    xf = x_ref[...]                                       # (Bt*N, C) f32
    m, c = xf.shape
    bt = m // n_nodes

    # --- Grapher fc1 (1x1 conv), bf16 MXU / f32 accumulation -----------------
    hf = jnp.dot(xf.astype(jnp.bfloat16), wfc1[...],
                 preferred_element_type=jnp.float32) + bfc1[...]   # (Bt*N, C)
    hf_bf = hf.astype(jnp.bfloat16)

    # per-image constants for the KNN selection
    row_idx = jax.lax.broadcasted_iota(jnp.int32, (n_nodes, n_nodes), 0)
    col_idx = jax.lax.broadcasted_iota(jnp.int32, (n_nodes, n_nodes), 1)
    eye = (row_idx == col_idx).astype(jnp.float32)
    colf = col_idx.astype(jnp.float32)
    big = jnp.float32(1e30)

    # --- per-image KNN max-relative aggregation (static unroll over Bt) ------
    aggs = []
    for b in range(bt):
        h_b = hf[b * n_nodes:(b + 1) * n_nodes]            # (N, C) f32
        hb_bf = hf_bf[b * n_nodes:(b + 1) * n_nodes]       # (N, C) bf16

        # inner(i, j) = h_i . h_j  (bf16 MXU, f32 acc)
        inner = jax.lax.dot_general(hb_bf, hb_bf, (((1,), (1,)), ((), ())),
                                    preferred_element_type=jnp.float32)  # (N,N)
        # ||h_j||^2 from the diagonal of `inner`: VPU multiply + sublane reduce
        # (replaces the former full N^2*C ones-matmul).
        colnorm = jnp.sum(inner * eye, axis=0, keepdims=True)            # (1,N)
        # dist(i, j) = ||h_j||^2 - 2 h_i.h_j  (row-constant ||h_i||^2 dropped;
        # per-row KNN unchanged).
        dist = colnorm - 2.0 * inner

        def knn_step(_, carry):
            d, agg = carry
            rowmin = jnp.min(d, axis=-1, keepdims=True)                  # (N,1)
            cand = jnp.where(d == rowmin, colf, jnp.float32(n_nodes))    # ties->low idx
            jstar = jnp.min(cand, axis=-1, keepdims=True)                # (N,1)
            onehot = (colf == jstar).astype(jnp.bfloat16)                # (N,N)
            neigh = jnp.dot(onehot, hb_bf,
                            preferred_element_type=jnp.float32)          # gather h_{j*}
            agg = jnp.maximum(agg, neigh - h_b)                          # max-relative
            d = jnp.where(colf == jstar, big, d)                         # drop selected
            return d, agg

        _, agg_b = jax.lax.fori_loop(0, k_nn, knn_step,
                                     (dist, jnp.zeros_like(h_b)),
                                     unroll=(n_nodes <= 64))
        aggs.append(agg_b)
    agg = jnp.concatenate(aggs, axis=0) if bt > 1 else aggs[0]           # (Bt*N, C)

    # --- merge [h, agg] (2C -> C): one stacked weight, two MXU passes --------
    # TODO(synk): could be a single (Bt*N,2C)x(2C,C) matmul via lane concat of
    # the activations; kept as two dots on ref slices to avoid a sub-128-lane
    # concat relayout (same FLOPs).
    z = (jnp.dot(hf_bf, wmr[0:c, :], preferred_element_type=jnp.float32)
         + jnp.dot(agg.astype(jnp.bfloat16), wmr[c:2 * c, :],
                   preferred_element_type=jnp.float32)
         + bmr[...])
    yf = xf + z                                            # Grapher residual (f32)

    # --- FFN ------------------------------------------------------------------
    u = jnp.dot(yf.astype(jnp.bfloat16), wff1[...],
                preferred_element_type=jnp.float32) + bff1[...]
    # TODO(synk): GELU inside the kernel uses the tanh approximation (erf
    # lowering is not relied on in Mosaic); PyTorch uses exact erf.
    u = jax.nn.gelu(u, approximate=True)
    v = jnp.dot(u.astype(jnp.bfloat16), wff2[...],
                preferred_element_type=jnp.float32) + bff2[...]
    out = yf + v                                           # FFN residual

    # --- fused inter-block epilogue: F.gelu + eval-mode BatchNorm2d scale ----
    out = jax.nn.gelu(out, approximate=True) * bn_scale
    # F.dropout(p=0.7, training=False) -> identity
    o_ref[...] = out.astype(o_ref.dtype)


def vig_block(h, bp, *, n_nodes, k_nn, bn_scale):
    M, C = h.shape                      # M = B * n_nodes, node-major
    B = M // n_nodes
    Hf = bp["w_ff1"].shape[1]
    Bt = _largest_divisor(B, 4)         # images per grid step (KNN unrolled per image)
    rows = Bt * n_nodes
    grid = (B // Bt,)

    def full(shape):
        return pl.BlockSpec(shape, lambda i: (0,) * len(shape))

    knn_flops = 2 * B * n_nodes * n_nodes * C * (k_nn + 1)
    node_flops = 2 * M * C * (C + 2 * C + Hf) + 2 * M * Hf * C
    weight_bytes = 2 * (3 * C * C + 2 * C * Hf) + 4 * (3 * C + Hf)
    cost = pl.CostEstimate(
        flops=knn_flops + node_flops,
        transcendentals=M * (Hf + C),
        bytes_accessed=8 * M * C + (B // Bt) * weight_bytes)

    return pl.pallas_call(
        functools.partial(block_kernel, n_nodes=n_nodes, k_nn=k_nn,
                          bn_scale=bn_scale),
        out_shape=jax.ShapeDtypeStruct((M, C), jnp.float32),
        grid=grid,
        in_specs=[
            pl.BlockSpec((rows, C), lambda i: (i, 0)),
            full((C, C)), full((1, C)),            # fc1
            full((2 * C, C)), full((1, C)),        # max-relative merge (2C -> C)
            full((C, Hf)), full((1, Hf)),          # ffn up
            full((Hf, C)), full((1, C)),           # ffn down
        ],
        out_specs=pl.BlockSpec((rows, C), lambda i: (i, 0)),
        compiler_params=pltpu.CompilerParams(
            dimension_semantics=("parallel",),
            vmem_limit_bytes=_VMEM_LIMIT),
        cost_estimate=cost,
    )(h, bp["w_fc1"], bp["b_fc1"], bp["w_mr"], bp["b_mr"],
      bp["w_ff1"], bp["b_ff1"], bp["w_ff2"], bp["b_ff2"])


# ----------------------------------------------------------------------------
# Glue (parameter init, patch extraction, full forward)
# ----------------------------------------------------------------------------
def kaiming(key, shape, fan_in):
    # kaiming_normal_ (fan_in, a=0): std = sqrt(2 / fan_in)
    return jax.random.normal(key, shape, jnp.float32) * jnp.sqrt(2.0 / fan_in)


def init_params(key, img_c, hw, C, out_c, num_blocks, patch):
    n_patch = (hw // patch) ** 2
    keys = jax.random.split(key, 3 + num_blocks)
    params = {}
    patch_in = img_c * patch * patch
    # weights stored bf16 (MXU inputs; halves weight DMA/VMEM); biases stay f32
    params["w_patch"] = kaiming(keys[0], (patch_in, C), patch_in).astype(jnp.bfloat16)
    params["b_patch"] = jnp.zeros((1, C), jnp.float32)     # Conv2d bias -> zeros

    blocks = []
    hidden = 4 * C
    for i in range(num_blocks):
        bk = jax.random.split(keys[1 + i], 4)
        blocks.append(dict(
            w_fc1=kaiming(bk[0], (C, C), C).astype(jnp.bfloat16),
            b_fc1=jnp.zeros((1, C), jnp.float32),
            w_mr=kaiming(bk[1], (2 * C, C), 2 * C).astype(jnp.bfloat16),
            b_mr=jnp.zeros((1, C), jnp.float32),
            w_ff1=kaiming(bk[2], (C, hidden), C).astype(jnp.bfloat16),
            b_ff1=jnp.zeros((1, hidden), jnp.float32),
            w_ff2=kaiming(bk[3], (hidden, C), hidden).astype(jnp.bfloat16),
            b_ff2=jnp.zeros((1, C), jnp.float32),
        ))
    params["blocks"] = blocks

    head_in = C * n_patch
    # Linear(head_in, 512, bias=False): generated in PyTorch's channel-major
    # flatten order and row-permuted ONCE so the kernel can consume the natural
    # node-major (B, N*C) flatten with no runtime transpose.
    w1_cm = kaiming(keys[1 + num_blocks], (head_in, 512), head_in)
    w1_nat = (w1_cm.reshape(C, n_patch, 512)
              .transpose(1, 0, 2)
              .reshape(n_patch * C, 512))
    params["w_head1"] = w1_nat.astype(jnp.bfloat16)
    params["w_head2"] = kaiming(keys[2 + num_blocks], (512, out_c), 512).astype(jnp.bfloat16)
    params["b_head2"] = jnp.zeros((1, out_c), jnp.float32)
    return params


def patchify(x, p):
    """NCHW image -> (B, N, Cin*p*p) patches (matches Conv2d(k=p, stride=p))."""
    B, Cin, H, W = x.shape
    hp, wp = H // p, W // p
    x = x.reshape(B, Cin, hp, p, wp, p)
    x = x.transpose(0, 2, 4, 1, 3, 5)            # (B, hp, wp, Cin, p, p)
    return x.reshape(B, hp * wp, Cin * p * p)


def isotropic_vig_forward(x, params, *, patch, k_nn):
    B = x.shape[0]
    # Patchifier (assumed: strided-conv patch embedding) -> node-major (B*N, C)
    patches = patchify(x, patch)
    _, N, Kp = patches.shape
    h = linear(patches.reshape(B * N, Kp), params["w_patch"], params["b_patch"])
    C = h.shape[-1]

    # eval-mode BatchNorm2d: weight=1, bias=0, running stats (0, 1) -> scalar
    # scale; fused together with the inter-block F.gelu inside the block kernel.
    bn_scale = 1.0 / math.sqrt(1.0 + 1e-5)
    for bp in params["blocks"]:
        h = vig_block(h, bp, n_nodes=N, k_nn=k_nn, bn_scale=bn_scale)

    # natural node-major flatten; w_head1 was pre-permuted at init so this
    # matches PyTorch's channel-major x.flatten(1) with no runtime transpose.
    flat = h.reshape(B, N * C)
    # head: Dropout(0.1) eval -> identity; Linear(bias=False); exact GELU; Linear
    z = linear(flat, params["w_head1"])
    z = jax.nn.gelu(z, approximate=False)        # nn.GELU() exact (tiny, stays in XLA)
    out = linear(z, params["w_head2"], params["b_head2"])
    return out


if __name__ == "__main__":
    key = jax.random.PRNGKey(0)
    k_x, k_p = jax.random.split(key)

    IMG_HW, IMG_C, PATCH = 16, 3, 4              # 4x4 patch grid -> N = 16 nodes
    HIDDEN_C, OUT_C = 8, 10
    NUM_BLOCKS, K_NN = 2, 4                      # kernel_size = #KNN neighbors

    params = init_params(k_p, IMG_C, IMG_HW, HIDDEN_C, OUT_C, NUM_BLOCKS, PATCH)
    x = jax.random.normal(k_x, (2, IMG_C, IMG_HW, IMG_HW), jnp.float32)  # NCHW

    fwd = jax.jit(functools.partial(isotropic_vig_forward, patch=PATCH, k_nn=K_NN))
    y = fwd(x, params)
    jax.block_until_ready(y)
    assert y.shape == (2, OUT_C), y.shape
    print("KERNEL_OK")
</pallas_src>

<mosaic_0001>
module attributes {stable_mosaic.version = 11 : i64} {
  func.func @_linear_kernel(%arg0: i32, %arg1: i32, %arg2: i32, %arg3: memref<32x48xf32, #tpu.memory_space<vmem>>, %arg4: memref<48x8xbf16, #tpu.memory_space<vmem>>, %arg5: memref<1x8xf32, #tpu.memory_space<vmem>>, %arg6: memref<32x8xf32, #tpu.memory_space<vmem>>, %arg7: memref<32x8xf32, #tpu.memory_space<vmem>>) attributes {dimension_semantics = [#tpu.dimension_semantics<parallel>, #tpu.dimension_semantics<parallel>, #tpu.dimension_semantics<arbitrary>], iteration_bounds = array<i64: 1, 1, 1>, scalar_prefetch = 0 : i64, scratch_operands = 1 : i64, tpu.core_type = #tpu.core_type<tc>, window_params = [{transform_indices = @transform_0, window_bounds = array<i64: 32, 48>}, {transform_indices = @transform_1, window_bounds = array<i64: 48, 8>}, {transform_indices = @transform_2, window_bounds = array<i64: 1, 8>}, {transform_indices = @transform_3, window_bounds = array<i64: 32, 8>}]} {
    %c0_i32 = arith.constant 0 : i32
    %0 = arith.cmpi eq, %arg2, %c0_i32 : i32
    %1 = arith.extui %0 : i1 to i32
    %c0_i32_0 = arith.constant 0 : i32
    %2 = arith.cmpi ne, %1, %c0_i32_0 : i32
    scf.if %2 {
      %cst_10 = arith.constant 0.000000e+00 : f32
      %13 = vector.broadcast %cst_10 : f32 to vector<32x8xf32>
      %c0_11 = arith.constant 0 : index
      %c0_12 = arith.constant 0 : index
      %14 = vector.load %arg7[%c0_11, %c0_12] : memref<32x8xf32, #tpu.memory_space<vmem>>, vector<32x8xf32>
      tpu.vector_store %arg7[%c0_11, %c0_12], %13 {strides = array<i32>} : memref<32x8xf32, #tpu.memory_space<vmem>>, vector<32x8xf32>,
    } else {
    }
    %c0 = arith.constant 0 : index
    %c0_1 = arith.constant 0 : index
    %3 = vector.load %arg7[%c0, %c0_1] : memref<32x8xf32, #tpu.memory_space<vmem>>, vector<32x8xf32>
    %c0_2 = arith.constant 0 : index
    %c0_3 = arith.constant 0 : index
    %4 = vector.load %arg3[%c0_2, %c0_3] : memref<32x48xf32, #tpu.memory_space<vmem>>, vector<32x48xf32>
    %5 = arith.truncf %4 : vector<32x48xf32> to vector<32x48xbf16>
    %c0_4 = arith.constant 0 : index
    %c0_5 = arith.constant 0 : index
    %6 = vector.load %arg4[%c0_4, %c0_5] : memref<48x8xbf16, #tpu.memory_space<vmem>>, vector<48x8xbf16>
    %cst = arith.constant dense<0.000000e+00> : vector<32x8xf32>
    %7 = tpu.matmul %5, %6, %cst {dimension_numbers = #tpu.dot_dimension_numbers<[1], [0], [0], [1], [0, 0, 1, 1], [], []>} : vector<32x48xbf16>, vector<48x8xbf16>, vector<32x8xf32> -> vector<32x8xf32>
    %8 = arith.addf %3, %7 : vector<32x8xf32>
    %c0_6 = arith.constant 0 : index
    %c0_7 = arith.constant 0 : index
    %9 = vector.load %arg7[%c0_6, %c0_7] : memref<32x8xf32, #tpu.memory_space<vmem>>, vector<32x8xf32>
    tpu.vector_store %arg7[%c0_6, %c0_7], %8 {strides = array<i32>} : memref<32x8xf32, #tpu.memory_space<vmem>>, vector<32x8xf32>,
    %c0_i32_8 = arith.constant 0 : i32
    %10 = arith.cmpi eq, %arg2, %c0_i32_8 : i32
    %11 = arith.extui %10 : i1 to i32
    %c0_i32_9 = arith.constant 0 : i32
    %12 = arith.cmpi ne, %11, %c0_i32_9 : i32
    scf.if %12 {
      %c0_10 = arith.constant 0 : index
      %c0_11 = arith.constant 0 : index
      %13 = vector.load %arg7[%c0_10, %c0_11] : memref<32x8xf32, #tpu.memory_space<vmem>>, vector<32x8xf32>
      %c0_12 = arith.constant 0 : index
      %c0_13 = arith.constant 0 : index
      %14 = vector.load %arg5[%c0_12, %c0_13] : memref<1x8xf32, #tpu.memory_space<vmem>>, vector<1x8xf32>
      %15 = vector.broadcast %14 : vector<1x8xf32> to vector<32x8xf32>
      %16 = arith.addf %13, %15 : vector<32x8xf32>
      %c0_14 = arith.constant 0 : index
      %c0_15 = arith.constant 0 : index
      %17 = vector.load %arg6[%c0_14, %c0_15] : memref<32x8xf32, #tpu.memory_space<vmem>>, vector<32x8xf32>
      tpu.vector_store %arg6[%c0_14, %c0_15], %16 {strides = array<i32>} : memref<32x8xf32, #tpu.memory_space<vmem>>, vector<32x8xf32>,
    } else {
    }
    return
  }
  func.func @transform_0(%arg0: i32, %arg1: i32, %arg2: i32) -> (i32, i32) {
    %c0_i32 = arith.constant 0 : i32
    return %arg0, %arg2 : i32, i32
  }
  func.func @transform_1(%arg0: i32, %arg1: i32, %arg2: i32) -> (i32, i32) {
    %c0_i32 = arith.constant 0 : i32
    return %arg2, %arg1 : i32, i32
  }
  func.func @transform_2(%arg0: i32, %arg1: i32, %arg2: i32) -> (i32, i32) {
    %c0_i32 = arith.constant 0 : i32
    %c0_i32_0 = arith.constant 0 : i32
    return %c0_i32, %arg1 : i32, i32
  }
  func.func @transform_3(%arg0: i32, %arg1: i32, %arg2: i32) -> (i32, i32) {
    %c0_i32 = arith.constant 0 : i32
    return %arg0, %arg1 : i32, i32
  }
}

module attributes {stable_mosaic.version = 11 : i64} {
  func.func @_linear_kernel(%arg0: i32, %arg1: i32, %arg2: i32, %arg3: memref<2x128xf32, #tpu.memory_space<vmem>>, %arg4: memref<128x512xbf16, #tpu.memory_space<vmem>>, %arg5: memref<2x512xf32, #tpu.memory_space<vmem>>, %arg6: memref<2x512xf32, #tpu.memory_space<vmem>>) attributes {dimension_semantics = [#tpu.dimension_semantics<parallel>, #tpu.dimension_semantics<parallel>, #tpu.dimension_semantics<arbitrary>], iteration_bounds = array<i64: 1, 1, 1>, scalar_prefetch = 0 : i64, scratch_operands = 1 : i64, tpu.core_type = #tpu.core_type<tc>, window_params = [{transform_indices = @transform_0, window_bounds = array<i64: 2, 128>}, {transform_indices = @transform_1, window_bounds = array<i64: 128, 512>}, {transform_indices = @transform_2, window_bounds = array<i64: 2, 512>}]} {
    %c0_i32 = arith.constant 0 : i32
    %0 = arith.cmpi eq, %arg2, %c0_i32 : i32
    %1 = arith.extui %0 : i1 to i32
    %c0_i32_0 = arith.constant 0 : i32
    %2 = arith.cmpi ne, %1, %c0_i32_0 : i32
    scf.if %2 {
      %cst_10 = arith.constant 0.000000e+00 : f32
      %13 = vector.broadcast %cst_10 : f32 to vector<2x512xf32>
      %c0_11 = arith.constant 0 : index
      %c0_12 = arith.constant 0 : index
      %14 = vector.load %arg6[%c0_11, %c0_12] : memref<2x512xf32, #tpu.memory_space<vmem>>, vector<2x512xf32>
      tpu.vector_store %arg6[%c0_11, %c0_12], %13 {strides = array<i32>} : memref<2x512xf32, #tpu.memory_space<vmem>>, vector<2x512xf32>,
    } else {
    }
    %c0 = arith.constant 0 : index
    %c0_1 = arith.constant 0 : index
    %3 = vector.load %arg6[%c0, %c0_1] : memref<2x512xf32, #tpu.memory_space<vmem>>, vector<2x512xf32>
    %c0_2 = arith.constant 0 : index
    %c0_3 = arith.constant 0 : index
    %4 = vector.load %arg3[%c0_2, %c0_3] : memref<2x128xf32, #tpu.memory_space<vmem>>, vector<2x128xf32>
    %5 = arith.truncf %4 : vector<2x128xf32> to vector<2x128xbf16>
    %c0_4 = arith.constant 0 : index
    %c0_5 = arith.constant 0 : index
    %6 = vector.load %arg4[%c0_4, %c0_5] : memref<128x512xbf16, #tpu.memory_space<vmem>>, vector<128x512xbf16>
    %cst = arith.constant dense<0.000000e+00> : vector<2x512xf32>
    %7 = tpu.matmul %5, %6, %cst {dimension_numbers = #tpu.dot_dimension_numbers<[1], [0], [0], [1], [0, 0, 1, 1], [], []>} : vector<2x128xbf16>, vector<128x512xbf16>, vector<2x512xf32> -> vector<2x512xf32>
    %8 = arith.addf %3, %7 : vector<2x512xf32>
    %c0_6 = arith.constant 0 : index
    %c0_7 = arith.constant 0 : index
    %9 = vector.load %arg6[%c0_6, %c0_7] : memref<2x512xf32, #tpu.memory_space<vmem>>, vector<2x512xf32>
    tpu.vector_store %arg6[%c0_6, %c0_7], %8 {strides = array<i32>} : memref<2x512xf32, #tpu.memory_space<vmem>>, vector<2x512xf32>,
    %c0_i32_8 = arith.constant 0 : i32
    %10 = arith.cmpi eq, %arg2, %c0_i32_8 : i32
    %11 = arith.extui %10 : i1 to i32
    %c0_i32_9 = arith.constant 0 : i32
    %12 = arith.cmpi ne, %11, %c0_i32_9 : i32
    scf.if %12 {
      %c0_10 = arith.constant 0 : index
      %c0_11 = arith.constant 0 : index
      %13 = vector.load %arg6[%c0_10, %c0_11] : memref<2x512xf32, #tpu.memory_space<vmem>>, vector<2x512xf32>
      %c0_12 = arith.constant 0 : index
      %c0_13 = arith.constant 0 : index
      %14 = vector.load %arg5[%c0_12, %c0_13] : memref<2x512xf32, #tpu.memory_space<vmem>>, vector<2x512xf32>
      tpu.vector_store %arg5[%c0_12, %c0_13], %13 {strides = array<i32>} : memref<2x512xf32, #tpu.memory_space<vmem>>, vector<2x512xf32>,
    } else {
    }
    return
  }
  func.func @transform_0(%arg0: i32, %arg1: i32, %arg2: i32) -> (i32, i32) {
    %c0_i32 = arith.constant 0 : i32
    return %arg0, %arg2 : i32, i32
  }
  func.func @transform_1(%arg0: i32, %arg1: i32, %arg2: i32) -> (i32, i32) {
    %c0_i32 = arith.constant 0 : i32
    return %arg2, %arg1 : i32, i32
  }
  func.func @transform_2(%arg0: i32, %arg1: i32, %arg2: i32) -> (i32, i32) {
    %c0_i32 = arith.constant 0 : i32
    return %arg0, %arg1 : i32, i32
  }
}

module attributes {stable_mosaic.version = 11 : i64} {
  func.func @block_kernel(%arg0: i32, %arg1: memref<32x8xf32, #tpu.memory_space<vmem>>, %arg2: memref<8x8xbf16, #tpu.memory_space<vmem>>, %arg3: memref<1x8xf32, #tpu.memory_space<vmem>>, %arg4: memref<16x8xbf16, #tpu.memory_space<vmem>>, %arg5: memref<1x8xf32, #tpu.memory_space<vmem>>, %arg6: memref<8x32xbf16, #tpu.memory_space<vmem>>, %arg7: memref<1x32xf32, #tpu.memory_space<vmem>>, %arg8: memref<32x8xbf16, #tpu.memory_space<vmem>>, %arg9: memref<1x8xf32, #tpu.memory_space<vmem>>, %arg10: memref<32x8xf32, #tpu.memory_space<vmem>>) attributes {dimension_semantics = [#tpu.dimension_semantics<parallel>], iteration_bounds = array<i64: 1>, scalar_prefetch = 0 : i64, scratch_operands = 0 : i64, tpu.core_type = #tpu.core_type<tc>, window_params = [{transform_indices = @transform_0, window_bounds = array<i64: 32, 8>}, {pipeline_mode = #tpu.pipeline_mode<synchronous>, transform_indices = @transform_1, window_bounds = array<i64: 8, 8>}, {pipeline_mode = #tpu.pipeline_mode<synchronous>, transform_indices = @transform_2, window_bounds = array<i64: 1, 8>}, {pipeline_mode = #tpu.pipeline_mode<synchronous>, transform_indices = @transform_3, window_bounds = array<i64: 16, 8>}, {pipeline_mode = #tpu.pipeline_mode<synchronous>, transform_indices = @transform_4, window_bounds = array<i64: 1, 8>}, {pipeline_mode = #tpu.pipeline_mode<synchronous>, transform_indices = @transform_5, window_bounds = array<i64: 8, 32>}, {pipeline_mode = #tpu.pipeline_mode<synchronous>, transform_indices = @transform_6, window_bounds = array<i64: 1, 32>}, {pipeline_mode = #tpu.pipeline_mode<synchronous>, transform_indices = @transform_7, window_bounds = array<i64: 32, 8>}, {pipeline_mode = #tpu.pipeline_mode<synchronous>, transform_indices = @transform_8, window_bounds = array<i64: 1, 8>}, {transform_indices = @transform_9, window_bounds = array<i64: 32, 8>}]} {
    %c0 = arith.constant 0 : index
    %c0_0 = arith.constant 0 : index
    %0 = vector.load %arg1[%c0, %c0_0] : memref<32x8xf32, #tpu.memory_space<vmem>>, vector<32x8xf32>
    %1 = arith.truncf %0 : vector<32x8xf32> to vector<32x8xbf16>
    %c0_1 = arith.constant 0 : index
    %c0_2 = arith.constant 0 : index
    %2 = vector.load %arg2[%c0_1, %c0_2] : memref<8x8xbf16, #tpu.memory_space<vmem>>, vector<8x8xbf16>
    %cst = arith.constant dense<0.000000e+00> : vector<32x8xf32>
    %3 = tpu.matmul %1, %2, %cst {dimension_numbers = #tpu.dot_dimension_numbers<[1], [0], [0], [1], [0, 0, 1, 1], [], []>} : vector<32x8xbf16>, vector<8x8xbf16>, vector<32x8xf32> -> vector<32x8xf32>
    %c0_3 = arith.constant 0 : index
    %c0_4 = arith.constant 0 : index
    %4 = vector.load %arg3[%c0_3, %c0_4] : memref<1x8xf32, #tpu.memory_space<vmem>>, vector<1x8xf32>
    %5 = vector.broadcast %4 : vector<1x8xf32> to vector<32x8xf32>
    %6 = arith.addf %3, %5 : vector<32x8xf32>
    %7 = arith.truncf %6 : vector<32x8xf32> to vector<32x8xbf16>
    %8 = tpu.iota {dimensions = array<i32: 0>} : vector<16x16xi32>
    %9 = tpu.iota {dimensions = array<i32: 1>} : vector<16x16xi32>
    %10 = arith.cmpi eq, %8, %9 : vector<16x16xi32>
    %11 = arith.extui %10 : vector<16x16xi1> to vector<16x16xi32>
    %12 = arith.sitofp %11 : vector<16x16xi32> to vector<16x16xf32>
    %13 = arith.sitofp %9 : vector<16x16xi32> to vector<16x16xf32>
    %14 = vector.extract_strided_slice %6 {offsets = [0, 0], sizes = [16, 8], strides = [1, 1]} : vector<32x8xf32> to vector<16x8xf32>
    %15 = vector.extract_strided_slice %7 {offsets = [0, 0], sizes = [16, 8], strides = [1, 1]} : vector<32x8xbf16> to vector<16x8xbf16>
    %cst_5 = arith.constant dense<0.000000e+00> : vector<16x16xf32>
    %16 = tpu.matmul %15, %15, %cst_5 {dimension_numbers = #tpu.dot_dimension_numbers<[1], [1], [0], [0], [0, 0, 1, 0], [], []>} : vector<16x8xbf16>, vector<16x8xbf16>, vector<16x16xf32> -> vector<16x16xf32>
    %17 = arith.mulf %16, %12 : vector<16x16xf32>
    %cst_6 = arith.constant dense<0.000000e+00> : vector<16xf32>
    %18 = vector.multi_reduction <add>, %17, %cst_6 [0] : vector<16x16xf32> to vector<16xf32>
    %19 = vector.shape_cast %18 : vector<16xf32> to vector<1x16xf32>
    %cst_7 = arith.constant 2.000000e+00 : f32
    %20 = vector.broadcast %cst_7 : f32 to vector<16x16xf32>
    %21 = arith.mulf %20, %16 : vector<16x16xf32>
    %22 = vector.broadcast %19 : vector<1x16xf32> to vector<16x16xf32>
    %23 = arith.subf %22, %21 : vector<16x16xf32>
    %cst_8 = arith.constant 0.000000e+00 : f32
    %24 = vector.broadcast %cst_8 : f32 to vector<16x8xf32>
    %cst_9 = arith.constant 1.000000e+30 : f32
    %c0_i32 = arith.constant 0 : i32
    %cst_10 = arith.constant dense<0x7F800000> : vector<16xf32>
    %25 = vector.multi_reduction <minimumf>, %23, %cst_10 [1] : vector<16x16xf32> to vector<16xf32>
    %26 = vector.shape_cast %25 : vector<16xf32> to vector<16x1xf32>
    %27 = vector.broadcast %26 : vector<16x1xf32> to vector<16x16xf32>
    %28 = arith.cmpf oeq, %23, %27 : vector<16x16xf32>
    %cst_11 = arith.constant 1.600000e+01 : f32
    %29 = vector.broadcast %cst_11 : f32 to vector<16x16xf32>
    %30 = arith.select %28, %13, %29 : vector<16x16xi1>, vector<16x16xf32>
    %cst_12 = arith.constant dense<0x7F800000> : vector<16xf32>
    %31 = vector.multi_reduction <minimumf>, %30, %cst_12 [1] : vector<16x16xf32> to vector<16xf32>
    %32 = vector.shape_cast %31 : vector<16xf32> to vector<16x1xf32>
    %33 = vector.broadcast %32 : vector<16x1xf32> to vector<16x16xf32>
    %34 = arith.cmpf oeq, %13, %33 : vector<16x16xf32>
    %35 = arith.extui %34 : vector<16x16xi1> to vector<16x16xi32>
    %36 = arith.sitofp %35 : vector<16x16xi32> to vector<16x16xf32>
    %37 = arith.truncf %36 : vector<16x16xf32> to vector<16x16xbf16>
    %cst_13 = arith.constant dense<0.000000e+00> : vector<16x8xf32>
    %38 = tpu.matmul %37, %15, %cst_13 {dimension_numbers = #tpu.dot_dimension_numbers<[1], [0], [0], [1], [0, 0, 1, 1], [], []>} : vector<16x16xbf16>, vector<16x8xbf16>, vector<16x8xf32> -> vector<16x8xf32>
    %39 = arith.subf %38, %14 : vector<16x8xf32>
    %40 = arith.maximumf %24, %39 : vector<16x8xf32>
    %41 = vector.broadcast %32 : vector<16x1xf32> to vector<16x16xf32>
    %42 = arith.cmpf oeq, %13, %41 : vector<16x16xf32>
    %43 = vector.broadcast %cst_9 : f32 to vector<16x16xf32>
    %44 = arith.select %42, %43, %23 : vector<16x16xi1>, vector<16x16xf32>
    %c1_i32 = arith.constant 1 : i32
    %cst_14 = arith.constant dense<0x7F800000> : vector<16xf32>
    %45 = vector.multi_reduction <minimumf>, %44, %cst_14 [1] : vector<16x16xf32> to vector<16xf32>
    %46 = vector.shape_cast %45 : vector<16xf32> to vector<16x1xf32>
    %47 = vector.broadcast %46 : vector<16x1xf32> to vector<16x16xf32>
    %48 = arith.cmpf oeq, %44, %47 : vector<16x16xf32>
    %cst_15 = arith.constant 1.600000e+01 : f32
    %49 = vector.broadcast %cst_15 : f32 to vector<16x16xf32>
    %50 = arith.select %48, %13, %49 : vector<16x16xi1>, vector<16x16xf32>
    %cst_16 = arith.constant dense<0x7F800000> : vector<16xf32>
    %51 = vector.multi_reduction <minimumf>, %50, %cst_16 [1] : vector<16x16xf32> to vector<16xf32>
    %52 = vector.shape_cast %51 : vector<16xf32> to vector<16x1xf32>
    %53 = vector.broadcast %52 : vector<16x1xf32> to vector<16x16xf32>
    %54 = arith.cmpf oeq, %13, %53 : vector<16x16xf32>
    %55 = arith.extui %54 : vector<16x16xi1> to vector<16x16xi32>
    %56 = arith.sitofp %55 : vector<16x16xi32> to vector<16x16xf32>
    %57 = arith.truncf %56 : vector<16x16xf32> to vector<16x16xbf16>
    %cst_17 = arith.constant dense<0.000000e+00> : vector<16x8xf32>
    %58 = tpu.matmul %57, %15, %cst_17 {dimension_numbers = #tpu.dot_dimension_numbers<[1], [0], [0], [1], [0, 0, 1, 1], [], []>} : vector<16x16xbf16>, vector<16x8xbf16>, vector<16x8xf32> -> vector<16x8xf32>
    %59 = arith.subf %58, %14 : vector<16x8xf32>
    %60 = arith.maximumf %40, %59 : vector<16x8xf32>
    %61 = vector.broadcast %52 : vector<16x1xf32> to vector<16x16xf32>
    %62 = arith.cmpf oeq, %13, %61 : vector<16x16xf32>
    %63 = vector.broadcast %cst_9 : f32 to vector<16x16xf32>
    %64 = arith.select %62, %63, %44 : vector<16x16xi1>, vector<16x16xf32>
    %c2_i32 = arith.constant 2 : i32
    %cst_18 = arith.constant dense<0x7F800000> : vector<16xf32>
    %65 = vector.multi_reduction <minimumf>, %64, %cst_18 [1] : vector<16x16xf32> to vector<16xf32>
    %66 = vector.shape_cast %65 : vector<16xf32> to vector<16x1xf32>
    %67 = vector.broadcast %66 : vector<16x1xf32> to vector<16x16xf32>
    %68 = arith.cmpf oeq, %64, %67 : vector<16x16xf32>
    %cst_19 = arith.constant 1.600000e+01 : f32
    %69 = vector.broadcast %cst_19 : f32 to vector<16x16xf32>
    %70 = arith.select %68, %13, %69 : vector<16x16xi1>, vector<16x16xf32>
    %cst_20 = arith.constant dense<0x7F800000> : vector<16xf32>
    %71 = vector.multi_reduction <minimumf>, %70, %cst_20 [1] : vector<16x16xf32> to vector<16xf32>
    %72 = vector.shape_cast %71 : vector<16xf32> to vector<16x1xf32>
    %73 = vector.broadcast %72 : vector<16x1xf32> to vector<16x16xf32>
    %74 = arith.cmpf oeq, %13, %73 : vector<16x16xf32>
    %75 = arith.extui %74 : vector<16x16xi1> to vector<16x16xi32>
    %76 = arith.sitofp %75 : vector<16x16xi32> to vector<16x16xf32>
    %77 = arith.truncf %76 : vector<16x16xf32> to vector<16x16xbf16>
    %cst_21 = arith.constant dense<0.000000e+00> : vector<16x8xf32>
    %78 = tpu.matmul %77, %15, %cst_21 {dimension_numbers = #tpu.dot_dimension_numbers<[1], [0], [0], [1], [0, 0, 1, 1], [], []>} : vector<16x16xbf16>, vector<16x8xbf16>, vector<16x8xf32> -> vector<16x8xf32>
    %79 = arith.subf %78, %14 : vector<16x8xf32>
    %80 = arith.maximumf %60, %79 : vector<16x8xf32>
    %81 = vector.broadcast %72 : vector<16x1xf32> to vector<16x16xf32>
    %82 = arith.cmpf oeq, %13, %81 : vector<16x16xf32>
    %83 = vector.broadcast %cst_9 : f32 to vector<16x16xf32>
    %84 = arith.select %82, %83, %64 : vector<16x16xi1>, vector<16x16xf32>
    %c3_i32 = arith.constant 3 : i32
    %cst_22 = arith.constant dense<0x7F800000> : vector<16xf32>
    %85 = vector.multi_reduction <minimumf>, %84, %cst_22 [1] : vector<16x16xf32> to vector<16xf32>
    %86 = vector.shape_cast %85 : vector<16xf32> to vector<16x1xf32>
    %87 = vector.broadcast %86 : vector<16x1xf32> to vector<16x16xf32>
    %88 = arith.cmpf oeq, %84, %87 : vector<16x16xf32>
    %cst_23 = arith.constant 1.600000e+01 : f32
    %89 = vector.broadcast %cst_23 : f32 to vector<16x16xf32>
    %90 = arith.select %88, %13, %89 : vector<16x16xi1>, vector<16x16xf32>
    %cst_24 = arith.constant dense<0x7F800000> : vector<16xf32>
    %91 = vector.multi_reduction <minimumf>, %90, %cst_24 [1] : vector<16x16xf32> to vector<16xf32>
    %92 = vector.shape_cast %91 : vector<16xf32> to vector<16x1xf32>
    %93 = vector.broadcast %92 : vector<16x1xf32> to vector<16x16xf32>
    %94 = arith.cmpf oeq, %13, %93 : vector<16x16xf32>
    %95 = arith.extui %94 : vector<16x16xi1> to vector<16x16xi32>
    %96 = arith.sitofp %95 : vector<16x16xi32> to vector<16x16xf32>
    %97 = arith.truncf %96 : vector<16x16xf32> to vector<16x16xbf16>
    %cst_25 = arith.constant dense<0.000000e+00> : vector<16x8xf32>
    %98 = tpu.matmul %97, %15, %cst_25 {dimension_numbers = #tpu.dot_dimension_numbers<[1], [0], [0], [1], [0, 0, 1, 1], [], []>} : vector<16x16xbf16>, vector<16x8xbf16>, vector<16x8xf32> -> vector<16x8xf32>
    %99 = arith.subf %98, %14 : vector<16x8xf32>
    %100 = arith.maximumf %80, %99 : vector<16x8xf32>
    %101 = vector.broadcast %92 : vector<16x1xf32> to vector<16x16xf32>
    %102 = arith.cmpf oeq, %13, %101 : vector<16x16xf32>
    %103 = vector.broadcast %cst_9 : f32 to vector<16x16xf32>
    %104 = arith.select %102, %103, %84 : vector<16x16xi1>, vector<16x16xf32>
    %105 = vector.extract_strided_slice %6 {offsets = [16, 0], sizes = [16, 8], strides = [1, 1]} : vector<32x8xf32> to vector<16x8xf32>
    %106 = vector.extract_strided_slice %7 {offsets = [16, 0], sizes = [16, 8], strides = [1, 1]} : vector<32x8xbf16> to vector<16x8xbf16>
    %cst_26 = arith.constant dense<0.000000e+00> : vector<16x16xf32>
    %107 = tpu.matmul %106, %106, %cst_26 {dimension_numbers = #tpu.dot_dimension_numbers<[1], [1], [0], [0], [0, 0, 1, 0], [], []>} : vector<16x8xbf16>, vector<16x8xbf16>, vector<16x16xf32> -> vector<16x16xf32>
    %108 = arith.mulf %107, %12 : vector<16x16xf32>
    %cst_27 = arith.constant dense<0.000000e+00> : vector<16xf32>
    %109 = vector.multi_reduction <add>, %108, %cst_27 [0] : vector<16x16xf32> to vector<16xf32>
    %110 = vector.shape_cast %109 : vector<16xf32> to vector<1x16xf32>
    %cst_28 = arith.constant 2.000000e+00 : f32
    %111 = vector.broadcast %cst_28 : f32 to vector<16x16xf32>
    %112 = arith.mulf %111, %107 : vector<16x16xf32>
    %113 = vector.broadcast %110 : vector<1x16xf32> to vector<16x16xf32>
    %114 = arith.subf %113, %112 : vector<16x16xf32>
    %cst_29 = arith.constant 0.000000e+00 : f32
    %115 = vector.broadcast %cst_29 : f32 to vector<16x8xf32>
    %cst_30 = arith.constant 1.000000e+30 : f32
    %c0_i32_31 = arith.constant 0 : i32
    %cst_32 = arith.constant dense<0x7F800000> : vector<16xf32>
    %116 = vector.multi_reduction <minimumf>, %114, %cst_32 [1] : vector<16x16xf32> to vector<16xf32>
    %117 = vector.shape_cast %116 : vector<16xf32> to vector<16x1xf32>
    %118 = vector.broadcast %117 : vector<16x1xf32> to vector<16x16xf32>
    %119 = arith.cmpf oeq, %114, %118 : vector<16x16xf32>
    %cst_33 = arith.constant 1.600000e+01 : f32
    %120 = vector.broadcast %cst_33 : f32 to vector<16x16xf32>
    %121 = arith.select %119, %13, %120 : vector<16x16xi1>, vector<16x16xf32>
    %cst_34 = arith.constant dense<0x7F800000> : vector<16xf32>
    %122 = vector.multi_reduction <minimumf>, %121, %cst_34 [1] : vector<16x16xf32> to vector<16xf32>
    %123 = vector.shape_cast %122 : vector<16xf32> to vector<16x1xf32>
    %124 = vector.broadcast %123 : vector<16x1xf32> to vector<16x16xf32>
    %125 = arith.cmpf oeq, %13, %124 : vector<16x16xf32>
    %126 = arith.extui %125 : vector<16x16xi1> to vector<16x16xi32>
    %127 = arith.sitofp %126 : vector<16x16xi32> to vector<16x16xf32>
    %128 = arith.truncf %127 : vector<16x16xf32> to vector<16x16xbf16>
    %cst_35 = arith.constant dense<0.000000e+00> : vector<16x8xf32>
    %129 = tpu.matmul %128, %106, %cst_35 {dimension_numbers = #tpu.dot_dimension_numbers<[1], [0], [0], [1], [0, 0, 1, 1], [], []>} : vector<16x16xbf16>, vector<16x8xbf16>, vector<16x8xf32> -> vector<16x8xf32>
    %130 = arith.subf %129, %105 : vector<16x8xf32>
    %131 = arith.maximumf %115, %130 : vector<16x8xf32>
    %132 = vector.broadcast %123 : vector<16x1xf32> to vector<16x16xf32>
    %133 = arith.cmpf oeq, %13, %132 : vector<16x16xf32>
    %134 = vector.broadcast %cst_30 : f32 to vector<16x16xf32>
    %135 = arith.select %133, %134, %114 : vector<16x16xi1>, vector<16x16xf32>
    %c1_i32_36 = arith.constant 1 : i32
    %cst_37 = arith.constant dense<0x7F800000> : vector<16xf32>
    %136 = vector.multi_reduction <minimumf>, %135, %cst_37 [1] : vector<16x16xf32> to vector<16xf32>
    %137 = vector.shape_cast %136 : vector<16xf32> to vector<16x1xf32>
    %138 = vector.broadcast %137 : vector<16x1xf32> to vector<16x16xf32>
    %139 = arith.cmpf oeq, %135, %138 : vector<16x16xf32>
    %cst_38 = arith.constant 1.600000e+01 : f32
    %140 = vector.broadcast %cst_38 : f32 to vector<16x16xf32>
    %141 = arith.select %139, %13, %140 : vector<16x16xi1>, vector<16x16xf32>
    %cst_39 = arith.constant dense<0x7F800000> : vector<16xf32>
    %142 = vector.multi_reduction <minimumf>, %141, %cst_39 [1] : vector<16x16xf32> to vector<16xf32>
    %143 = vector.shape_cast %142 : vector<16xf32> to vector<16x1xf32>
    %144 = vector.broadcast %143 : vector<16x1xf32> to vector<16x16xf32>
    %145 = arith.cmpf oeq, %13, %144 : vector<16x16xf32>
    %146 = arith.extui %145 : vector<16x16xi1> to vector<16x16xi32>
    %147 = arith.sitofp %146 : vector<16x16xi32> to vector<16x16xf32>
    %148 = arith.truncf %147 : vector<16x16xf32> to vector<16x16xbf16>
    %cst_40 = arith.constant dense<0.000000e+00> : vector<16x8xf32>
    %149 = tpu.matmul %148, %106, %cst_40 {dimension_numbers = #tpu.dot_dimension_numbers<[1], [0], [0], [1], [0, 0, 1, 1], [], []>} : vector<16x16xbf16>, vector<16x8xbf16>, vector<16x8xf32> -> vector<16x8xf32>
    %150 = arith.subf %149, %105 : vector<16x8xf32>
    %151 = arith.maximumf %131, %150 : vector<16x8xf32>
    %152 = vector.broadcast %143 : vector<16x1xf32> to vector<16x16xf32>
    %153 = arith.cmpf oeq, %13, %152 : vector<16x16xf32>
    %154 = vector.broadcast %cst_30 : f32 to vector<16x16xf32>
    %155 = arith.select %153, %154, %135 : vector<16x16xi1>, vector<16x16xf32>
    %c2_i32_41 = arith.constant 2 : i32
    %cst_42 = arith.constant dense<0x7F800000> : vector<16xf32>
    %156 = vector.multi_reduction <minimumf>, %155, %cst_42 [1] : vector<16x16xf32> to vector<16xf32>
    %157 = vector.shape_cast %156 : vector<16xf32> to vector<16x1xf32>
    %158 = vector.broadcast %157 : vector<16x1xf32> to vector<16x16xf32>
    %159 = arith.cmpf oeq, %155, %158 : vector<16x16xf32>
    %cst_43 = arith.constant 1.600000e+01 : f32
    %160 = vector.broadcast %cst_43 : f32 to vector<16x16xf32>
    %161 = arith.select %159, %13, %160 : vector<16x16xi1>, vector<16x16xf32>
    %cst_44 = arith.constant dense<0x7F800000> : vector<16xf32>
    %162 = vector.multi_reduction <minimumf>, %161, %cst_44 [1] : vector<16x16xf32> to vector<16xf32>
    %163 = vector.shape_cast %162 : vector<16xf32> to vector<16x1xf32>
    %164 = vector.broadcast %163 : vector<16x1xf32> to vector<16x16xf32>
    %165 = arith.cmpf oeq, %13, %164 : vector<16x16xf32>
    %166 = arith.extui %165 : vector<16x16xi1> to vector<16x16xi32>
    %167 = arith.sitofp %166 : vector<16x16xi32> to vector<16x16xf32>
    %168 = arith.truncf %167 : vector<16x16xf32> to vector<16x16xbf16>
    %cst_45 = arith.constant dense<0.000000e+00> : vector<16x8xf32>
    %169 = tpu.matmul %168, %106, %cst_45 {dimension_numbers = #tpu.dot_dimension_numbers<[1], [0], [0], [1], [0, 0, 1, 1], [], []>} : vector<16x16xbf16>, vector<16x8xbf16>, vector<16x8xf32> -> vector<16x8xf32>
    %170 = arith.subf %169, %105 : vector<16x8xf32>
    %171 = arith.maximumf %151, %170 : vector<16x8xf32>
    %172 = vector.broadcast %163 : vector<16x1xf32> to vector<16x16xf32>
    %173 = arith.cmpf oeq, %13, %172 : vector<16x16xf32>
    %174 = vector.broadcast %cst_30 : f32 to vector<16x16xf32>
    %175 = arith.select %173, %174, %155 : vector<16x16xi1>, vector<16x16xf32>
    %c3_i32_46 = arith.constant 3 : i32
    %cst_47 = arith.constant dense<0x7F800000> : vector<16xf32>
    %176 = vector.multi_reduction <minimumf>, %175, %cst_47 [1] : vector<16x16xf32> to vector<16xf32>
    %177 = vector.shape_cast %176 : vector<16xf32> to vector<16x1xf32>
    %178 = vector.broadcast %177 : vector<16x1xf32> to vector<16x16xf32>
    %179 = arith.cmpf oeq, %175, %178 : vector<16x16xf32>
    %cst_48 = arith.constant 1.600000e+01 : f32
    %180 = vector.broadcast %cst_48 : f32 to vector<16x16xf32>
    %181 = arith.select %179, %13, %180 : vector<16x16xi1>, vector<16x16xf32>
    %cst_49 = arith.constant dense<0x7F800000> : vector<16xf32>
    %182 = vector.multi_reduction <minimumf>, %181, %cst_49 [1] : vector<16x16xf32> to vector<16xf32>
    %183 = vector.shape_cast %182 : vector<16xf32> to vector<16x1xf32>
    %184 = vector.broadcast %183 : vector<16x1xf32> to vector<16x16xf32>
    %185 = arith.cmpf oeq, %13, %184 : vector<16x16xf32>
    %186 = arith.extui %185 : vector<16x16xi1> to vector<16x16xi32>
    %187 = arith.sitofp %186 : vector<16x16xi32> to vector<16x16xf32>
    %188 = arith.truncf %187 : vector<16x16xf32> to vector<16x16xbf16>
    %cst_50 = arith.constant dense<0.000000e+00> : vector<16x8xf32>
    %189 = tpu.matmul %188, %106, %cst_50 {dimension_numbers = #tpu.dot_dimension_numbers<[1], [0], [0], [1], [0, 0, 1, 1], [], []>} : vector<16x16xbf16>, vector<16x8xbf16>, vector<16x8xf32> -> vector<16x8xf32>
    %190 = arith.subf %189, %105 : vector<16x8xf32>
    %191 = arith.maximumf %171, %190 : vector<16x8xf32>
    %192 = vector.broadcast %183 : vector<16x1xf32> to vector<16x16xf32>
    %193 = arith.cmpf oeq, %13, %192 : vector<16x16xf32>
    %194 = vector.broadcast %cst_30 : f32 to vector<16x16xf32>
    %195 = arith.select %193, %194, %175 : vector<16x16xi1>, vector<16x16xf32>
    %196 = tpu.concatenate %100, %191 in 0 : vector<16x8xf32>, vector<16x8xf32> -> vector<32x8xf32>
    %c0_51 = arith.constant 0 : index
    %c0_52 = arith.constant 0 : index
    %197 = vector.load %arg4[%c0_51, %c0_52] : memref<16x8xbf16, #tpu.memory_space<vmem>>, vector<8x8xbf16>
    %cst_53 = arith.constant dense<0.000000e+00> : vector<32x8xf32>
    %198 = tpu.matmul %7, %197, %cst_53 {dimension_numbers = #tpu.dot_dimension_numbers<[1], [0], [0], [1], [0, 0, 1, 1], [], []>} : vector<32x8xbf16>, vector<8x8xbf16>, vector<32x8xf32> -> vector<32x8xf32>
    %199 = arith.truncf %196 : vector<32x8xf32> to vector<32x8xbf16>
    %c8 = arith.constant 8 : index
    %c0_54 = arith.constant 0 : index
    %200 = vector.load %arg4[%c8, %c0_54] : memref<16x8xbf16, #tpu.memory_space<vmem>>, vector<8x8xbf16>
    %cst_55 = arith.constant dense<0.000000e+00> : vector<32x8xf32>
    %201 = tpu.matmul %199, %200, %cst_55 {dimension_numbers = #tpu.dot_dimension_numbers<[1], [0], [0], [1], [0, 0, 1, 1], [], []>} : vector<32x8xbf16>, vector<8x8xbf16>, vector<32x8xf32> -> vector<32x8xf32>
    %202 = arith.addf %198, %201 : vector<32x8xf32>
    %c0_56 = arith.constant 0 : index
    %c0_57 = arith.constant 0 : index
    %203 = vector.load %arg5[%c0_56, %c0_57] : memref<1x8xf32, #tpu.memory_space<vmem>>, vector<1x8xf32>
    %204 = vector.broadcast %203 : vector<1x8xf32> to vector<32x8xf32>
    %205 = arith.addf %202, %204 : vector<32x8xf32>
    %206 = arith.addf %0, %205 : vector<32x8xf32>
    %207 = arith.truncf %206 : vector<32x8xf32> to vector<32x8xbf16>
    %c0_58 = arith.constant 0 : index
    %c0_59 = arith.constant 0 : index
    %208 = vector.load %arg6[%c0_58, %c0_59] : memref<8x32xbf16, #tpu.memory_space<vmem>>, vector<8x32xbf16>
    %cst_60 = arith.constant dense<0.000000e+00> : vector<32x32xf32>
    %209 = tpu.matmul %207, %208, %cst_60 {dimension_numbers = #tpu.dot_dimension_numbers<[1], [0], [0], [1], [0, 0, 1, 1], [], []>} : vector<32x8xbf16>, vector<8x32xbf16>, vector<32x32xf32> -> vector<32x32xf32>
    %c0_61 = arith.constant 0 : index
    %c0_62 = arith.constant 0 : index
    %210 = vector.load %arg7[%c0_61, %c0_62] : memref<1x32xf32, #tpu.memory_space<vmem>>, vector<1x32xf32>
    %211 = vector.broadcast %210 : vector<1x32xf32> to vector<32x32xf32>
    %212 = arith.addf %209, %211 : vector<32x32xf32>
    %213 = arith.mulf %212, %212 : vector<32x32xf32>
    %214 = arith.mulf %212, %213 : vector<32x32xf32>
    %cst_63 = arith.constant 4.471500e-02 : f32
    %215 = vector.broadcast %cst_63 : f32 to vector<32x32xf32>
    %216 = arith.mulf %215, %214 : vector<32x32xf32>
    %217 = arith.addf %212, %216 : vector<32x32xf32>
    %cst_64 = arith.constant 0.797884583 : f32
    %218 = vector.broadcast %cst_64 : f32 to vector<32x32xf32>
    %219 = arith.mulf %218, %217 : vector<32x32xf32>
    %220 = math.tanh %219 : vector<32x32xf32>
    %cst_65 = arith.constant 1.000000e+00 : f32
    %221 = vector.broadcast %cst_65 : f32 to vector<32x32xf32>
    %222 = arith.addf %221, %220 : vector<32x32xf32>
    %cst_66 = arith.constant 5.000000e-01 : f32
    %223 = vector.broadcast %cst_66 : f32 to vector<32x32xf32>
    %224 = arith.mulf %223, %222 : vector<32x32xf32>
    %225 = arith.mulf %212, %224 : vector<32x32xf32>
    %226 = arith.truncf %225 : vector<32x32xf32> to vector<32x32xbf16>
    %c0_67 = arith.constant 0 : index
    %c0_68 = arith.constant 0 : index
    %227 = vector.load %arg8[%c0_67, %c0_68] : memref<32x8xbf16, #tpu.memory_space<vmem>>, vector<32x8xbf16>
    %cst_69 = arith.constant dense<0.000000e+00> : vector<32x8xf32>
    %228 = tpu.matmul %226, %227, %cst_69 {dimension_numbers = #tpu.dot_dimension_numbers<[1], [0], [0], [1], [0, 0, 1, 1], [], []>} : vector<32x32xbf16>, vector<32x8xbf16>, vector<32x8xf32> -> vector<32x8xf32>
    %c0_70 = arith.constant 0 : index
    %c0_71 = arith.constant 0 : index
    %229 = vector.load %arg9[%c0_70, %c0_71] : memref<1x8xf32, #tpu.memory_space<vmem>>, vector<1x8xf32>
    %230 = vector.broadcast %229 : vector<1x8xf32> to vector<32x8xf32>
    %231 = arith.addf %228, %230 : vector<32x8xf32>
    %232 = arith.addf %206, %231 : vector<32x8xf32>
    %233 = arith.mulf %232, %232 : vector<32x8xf32>
    %234 = arith.mulf %232, %233 : vector<32x8xf32>
    %cst_72 = arith.constant 4.471500e-02 : f32
    %235 = vector.broadcast %cst_72 : f32 to vector<32x8xf32>
    %236 = arith.mulf %235, %234 : vector<32x8xf32>
    %237 = arith.addf %232, %236 : vector<32x8xf32>
    %cst_73 = arith.constant 0.797884583 : f32
    %238 = vector.broadcast %cst_73 : f32 to vector<32x8xf32>
    %239 = arith.mulf %238, %237 : vector<32x8xf32>
    %240 = math.tanh %239 : vector<32x8xf32>
    %cst_74 = arith.constant 1.000000e+00 : f32
    %241 = vector.broadcast %cst_74 : f32 to vector<32x8xf32>
    %242 = arith.addf %241, %240 : vector<32x8xf32>
    %cst_75 = arith.constant 5.000000e-01 : f32
    %243 = vector.broadcast %cst_75 : f32 to vector<32x8xf32>
    %244 = arith.mulf %243, %242 : vector<32x8xf32>
    %245 = arith.mulf %232, %244 : vector<32x8xf32>
    %cst_76 = arith.constant 0.999994993 : f32
    %246 = vector.broadcast %cst_76 : f32 to vector<32x8xf32>
    %247 = arith.mulf %245, %246 : vector<32x8xf32>
    %c0_77 = arith.constant 0 : index
    %c0_78 = arith.constant 0 : index
    %248 = vector.load %arg10[%c0_77, %c0_78] : memref<32x8xf32, #tpu.memory_space<vmem>>, vector<32x8xf32>
    tpu.vector_store %arg10[%c0_77, %c0_78], %247 {strides = array<i32>} : memref<32x8xf32, #tpu.memory_space<vmem>>, vector<32x8xf32>,
    return
  }
  func.func @transform_0(%arg0: i32) -> (i32, i32) {
    %c0_i32 = arith.constant 0 : i32
    %c0_i32_0 = arith.constant 0 : i32
    return %arg0, %c0_i32 : i32, i32
  }
  func.func @transform_1(%arg0: i32) -> (i32, i32) {
    %c0_i32 = arith.constant 0 : i32
    %c0_i32_0 = arith.constant 0 : i32
    %c0_i32_1 = arith.constant 0 : i32
    return %c0_i32, %c0_i32_0 : i32, i32
  }
  func.func @transform_2(%arg0: i32) -> (i32, i32) {
    %c0_i32 = arith.constant 0 : i32
    %c0_i32_0 = arith.constant 0 : i32
    %c0_i32_1 = arith.constant 0 : i32
    return %c0_i32, %c0_i32_0 : i32, i32
  }
  func.func @transform_3(%arg0: i32) -> (i32, i32) {
    %c0_i32 = arith.constant 0 : i32
    %c0_i32_0 = arith.constant 0 : i32
    %c0_i32_1 = arith.constant 0 : i32
    return %c0_i32, %c0_i32_0 : i32, i32
  }
  func.func @transform_4(%arg0: i32) -> (i32, i32) {
    %c0_i32 = arith.constant 0 : i32
    %c0_i32_0 = arith.constant 0 : i32
    %c0_i32_1 = arith.constant 0 : i32
    return %c0_i32, %c0_i32_0 : i32, i32
  }
  func.func @transform_5(%arg0: i32) -> (i32, i32) {
    %c0_i32 = arith.constant 0 : i32
    %c0_i32_0 = arith.constant 0 : i32
    %c0_i32_1 = arith.constant 0 : i32
    return %c0_i32, %c0_i32_0 : i32, i32
  }
  func.func @transform_6(%arg0: i32) -> (i32, i32) {
    %c0_i32 = arith.constant 0 : i32
    %c0_i32_0 = arith.constant 0 : i32
    %c0_i32_1 = arith.constant 0 : i32
    return %c0_i32, %c0_i32_0 : i32, i32
  }
  func.func @transform_7(%arg0: i32) -> (i32, i32) {
    %c0_i32 = arith.constant 0 : i32
    %c0_i32_0 = arith.constant 0 : i32
    %c0_i32_1 = arith.constant 0 : i32
    return %c0_i32, %c0_i32_0 : i32, i32
  }
  func.func @transform_8(%arg0: i32) -> (i32, i32) {
    %c0_i32 = arith.constant 0 : i32
    %c0_i32_0 = arith.constant 0 : i32
    %c0_i32_1 = arith.constant 0 : i32
    return %c0_i32, %c0_i32_0 : i32, i32
  }
  func.func @transform_9(%arg0: i32) -> (i32, i32) {
    %c0_i32 = arith.constant 0 : i32
    %c0_i32_0 = arith.constant 0 : i32
    return %arg0, %c0_i32 : i32, i32
  }
}

module attributes {stable_mosaic.version = 11 : i64} {
  func.func @_linear_kernel(%arg0: i32, %arg1: i32, %arg2: i32, %arg3: memref<2x512xf32, #tpu.memory_space<vmem>>, %arg4: memref<512x10xbf16, #tpu.memory_space<vmem>>, %arg5: memref<1x10xf32, #tpu.memory_space<vmem>>, %arg6: memref<2x10xf32, #tpu.memory_space<vmem>>, %arg7: memref<2x10xf32, #tpu.memory_space<vmem>>) attributes {dimension_semantics = [#tpu.dimension_semantics<parallel>, #tpu.dimension_semantics<parallel>, #tpu.dimension_semantics<arbitrary>], iteration_bounds = array<i64: 1, 1, 1>, scalar_prefetch = 0 : i64, scratch_operands = 1 : i64, tpu.core_type = #tpu.core_type<tc>, window_params = [{transform_indices = @transform_0, window_bounds = array<i64: 2, 512>}, {transform_indices = @transform_1, window_bounds = array<i64: 512, 10>}, {transform_indices = @transform_2, window_bounds = array<i64: 1, 10>}, {transform_indices = @transform_3, window_bounds = array<i64: 2, 10>}]} {
    %c0_i32 = arith.constant 0 : i32
    %0 = arith.cmpi eq, %arg2, %c0_i32 : i32
    %1 = arith.extui %0 : i1 to i32
    %c0_i32_0 = arith.constant 0 : i32
    %2 = arith.cmpi ne, %1, %c0_i32_0 : i32
    scf.if %2 {
      %cst_10 = arith.constant 0.000000e+00 : f32
      %13 = vector.broadcast %cst_10 : f32 to vector<2x10xf32>
      %c0_11 = arith.constant 0 : index
      %c0_12 = arith.constant 0 : index
      %14 = vector.load %arg7[%c0_11, %c0_12] : memref<2x10xf32, #tpu.memory_space<vmem>>, vector<2x10xf32>
      tpu.vector_store %arg7[%c0_11, %c0_12], %13 {strides = array<i32>} : memref<2x10xf32, #tpu.memory_space<vmem>>, vector<2x10xf32>,
    } else {
    }
    %c0 = arith.constant 0 : index
    %c0_1 = arith.constant 0 : index
    %3 = vector.load %arg7[%c0, %c0_1] : memref<2x10xf32, #tpu.memory_space<vmem>>, vector<2x10xf32>
    %c0_2 = arith.constant 0 : index
    %c0_3 = arith.constant 0 : index
    %4 = vector.load %arg3[%c0_2, %c0_3] : memref<2x512xf32, #tpu.memory_space<vmem>>, vector<2x512xf32>
    %5 = arith.truncf %4 : vector<2x512xf32> to vector<2x512xbf16>
    %c0_4 = arith.constant 0 : index
    %c0_5 = arith.constant 0 : index
    %6 = vector.load %arg4[%c0_4, %c0_5] : memref<512x10xbf16, #tpu.memory_space<vmem>>, vector<512x10xbf16>
    %cst = arith.constant dense<0.000000e+00> : vector<2x10xf32>
    %7 = tpu.matmul %5, %6, %cst {dimension_numbers = #tpu.dot_dimension_numbers<[1], [0], [0], [1], [0, 0, 1, 1], [], []>} : vector<2x512xbf16>, vector<512x10xbf16>, vector<2x10xf32> -> vector<2x10xf32>
    %8 = arith.addf %3, %7 : vector<2x10xf32>
    %c0_6 = arith.constant 0 : index
    %c0_7 = arith.constant 0 : index
    %9 = vector.load %arg7[%c0_6, %c0_7] : memref<2x10xf32, #tpu.memory_space<vmem>>, vector<2x10xf32>
    tpu.vector_store %arg7[%c0_6, %c0_7], %8 {strides = array<i32>} : memref<2x10xf32, #tpu.memory_space<vmem>>, vector<2x10xf32>,
    %c0_i32_8 = arith.constant 0 : i32
    %10 = arith.cmpi eq, %arg2, %c0_i32_8 : i32
    %11 = arith.extui %10 : i1 to i32
    %c0_i32_9 = arith.constant 0 : i32
    %12 = arith.cmpi ne, %11, %c0_i32_9 : i32
    scf.if %12 {
      %c0_10 = arith.constant 0 : index
      %c0_11 = arith.constant 0 : index
      %13 = vector.load %arg7[%c0_10, %c0_11] : memref<2x10xf32, #tpu.memory_space<vmem>>, vector<2x10xf32>
      %c0_12 = arith.constant 0 : index
      %c0_13 = arith.constant 0 : index
      %14 = vector.load %arg5[%c0_12, %c0_13] : memref<1x10xf32, #tpu.memory_space<vmem>>, vector<1x10xf32>
      %15 = vector.broadcast %14 : vector<1x10xf32> to vector<2x10xf32>
      %16 = arith.addf %13, %15 : vector<2x10xf32>
      %c0_14 = arith.constant 0 : index
      %c0_15 = arith.constant 0 : index
      %17 = vector.load %arg6[%c0_14, %c0_15] : memref<2x10xf32, #tpu.memory_space<vmem>>, vector<2x10xf32>
      tpu.vector_store %arg6[%c0_14, %c0_15], %16 {strides = array<i32>} : memref<2x10xf32, #tpu.memory_space<vmem>>, vector<2x10xf32>,
    } else {
    }
    return
  }
  func.func @transform_0(%arg0: i32, %arg1: i32, %arg2: i32) -> (i32, i32) {
    %c0_i32 = arith.constant 0 : i32
    return %arg0, %arg2 : i32, i32
  }
  func.func @transform_1(%arg0: i32, %arg1: i32, %arg2: i32) -> (i32, i32) {
    %c0_i32 = arith.constant 0 : i32
    return %arg2, %arg1 : i32, i32
  }
  func.func @transform_2(%arg0: i32, %arg1: i32, %arg2: i32) -> (i32, i32) {
    %c0_i32 = arith.constant 0 : i32
    %c0_i32_0 = arith.constant 0 : i32
    return %c0_i32, %arg1 : i32, i32
  }
  func.func @transform_3(%arg0: i32, %arg1: i32, %arg2: i32) -> (i32, i32) {
    %c0_i32 = arith.constant 0 : i32
    return %arg0, %arg1 : i32, i32
  }
}

</mosaic_0001>

<bundles_post_ra>
// kernel: isotropic_vig_forward.5
= control target key start
LH: loop header
LB: loop body
LE: loop exit
PB: predicated region body
PF: predicated region fallthrough
CT: control target
= control target key end

     0   :  { %vm19_vm0 = vcmask 64512   ;;  %v174_v1 = vmov 0.0   ;;  %vm58_vm1 = vcmask 392192   ;;  %s243_s1 = inlined_call_operand.vmem [shape: bf16[48,8], index: 1, kind: input, shape index: {}]   ;;  %s244_s0 = inlined_call_operand.vmem [shape: f32[32,48], index: 0, kind: input, shape index: {}]   ;;  %s245_s2 = inlined_call_operand.vmem [shape: f32[1,8], index: 2, kind: input, shape index: {}]   ;;  %s246_s3 = inlined_call_operand.vmem [shape: f32[32,8], index: 3, kind: output, shape index: {}]  }
   0x1   :  { %v171_v0 = vld [vmem:[%s243_s1] sm:$0xff]   ;;  %22 = vst.msk [vmem:[#allocation2 + $0x10] sm:$0xff] %vm19_vm0, %v174_v1  ;;  %20 = vst.msk [vmem:[#allocation2] sm:$0xff] %vm19_vm0, %v174_v1  ;;  %v172_v2 = vld [vmem:[%s243_s1 + $0x8] sm:$0xff]  }
   0x2   :  { %21 = vst.msk [vmem:[#allocation2 + $0x8] sm:$0xff] %vm19_vm0, %v174_v1  ;;  %23 = vst.msk [vmem:[#allocation2 + $0x18] sm:$0xff] %vm19_vm0, %v174_v1  ;;  %160 = vmatprep.subr.bf16.mxu0 %v171_v0  ;;  %v28_v3 = vld [vmem:[%s244_s0] sm:$0xff]  ;;  %v29_v4 = vld [vmem:[%s244_s0 + $0x8] sm:$0xff] }
   0x3   :  { %161 = vmatpush3.bf16.msra.mxu0 %v171_v0  ;;  %v173_v5 = vld [vmem:[%s243_s1 + $0x10] sm:$0xff]   ;;  %v32_v6 = vpack.c.bf16 %v29_v4, %v28_v3  ;;  %v31_v8 = vld [vmem:[%s244_s0 + $0x18] sm:$0xff]  ;;  %v154_v22 = vld [vmem:[%s245_s2] ss:$0 sm:$0xff] }
   0x4   :  { %162 = vmatprep.subr.bf16.mxu0 %v172_v2  ;;  %v30_v7 = vld [vmem:[%s244_s0 + $0x10] sm:$0xff] }
   0x5   :  { %166 = vmatprep.mubr.msk.bf16.mxu0 %vm58_vm1, %v32_v6  ;;  %v33_v9 = vpack.c.bf16 %v31_v8, %v30_v7 }
   0x7   :  { %163 = vmatpush3.bf16.msra.mxu0 %v172_v2 }
   0x8   :  { %164 = vmatprep.subr.bf16.mxu0 %v173_v5  ;;  %v26_v10 = vld [vmem:[#allocation2 + $0x10] sm:$0xff]  ;;  %v24_v11 = vld [vmem:[#allocation2] sm:$0xff] }
   0x9   :  { %v27_v13 = vld [vmem:[#allocation2 + $0x18] sm:$0xff]  ;;  %v25_v16 = vld [vmem:[#allocation2 + $0x8] sm:$0xff] }
   0xb   :  { %165 = vmatpush3.bf16.msra.mxu0 %v173_v5 }
   0xe   :  { %167 = vmatmul.mubr.msk.bf16.vlgmr.msra.gmra.mrb[0].mxu0 %vm58_vm1, %v33_v9 }
  0xe1   :  { %v168_v12 = vpop.f32.mrb[0].mxu0 }
  0xe2   :  { %v116_v14 = vadd.f32 %v168_v12, %v26_v10  ;;  %v99_v15 = vpop.f32.mrb[1].mxu0 }
  0xe3   :  { %v114_v17 = vadd.f32 %v99_v15, %v24_v11  ;;  %v169_v18 = vpop.f32.mrb[2].mxu0 }
  0xe4   :  { %121 = vst.msk [vmem:[#allocation2 + $0x10] sm:$0xff] %vm19_vm0, %v116_v14  ;;  %v117_v19 = vadd.f32 %v169_v18, %v27_v13  ;;  %v102_v20 = vpop.f32.mrb[3].mxu0 }
  0xe5   :  { %119 = vst.msk [vmem:[#allocation2] sm:$0xff] %vm19_vm0, %v114_v17  ;;  %v115_v21 = vadd.f32 %v102_v20, %v25_v16 }
  0xe6   :  { %122 = vst.msk [vmem:[#allocation2 + $0x18] sm:$0xff] %vm19_vm0, %v117_v19 }
  0xe7   :  { %120 = vst.msk [vmem:[#allocation2 + $0x8] sm:$0xff] %vm19_vm0, %v115_v21 }
  0xeb   :  { %v128_v23 = vld [vmem:[#allocation2 + $0x10] sm:$0xff] }
  0xec   :  { %v139_v24 = vadd.f32 %v154_v22, %v128_v23  ;;  %v126_v25 = vld [vmem:[#allocation2] sm:$0xff] }
  0xed   :  { %v137_v26 = vadd.f32 %v154_v22, %v126_v25  ;;  %v129_v27 = vld [vmem:[#allocation2 + $0x18] sm:$0xff] }
  0xee   :  { %143 = vst.msk [vmem:[%s246_s3 + $0x10] sm:$0xff] %vm19_vm0, %v139_v24  ;;  %v140_v28 = vadd.f32 %v154_v22, %v129_v27  ;;  %v127_v29 = vld [vmem:[#allocation2 + $0x8] sm:$0xff] }
  0xef   :  { %141 = vst.msk [vmem:[%s246_s3] sm:$0xff] %vm19_vm0, %v137_v26  ;;  %v138_v30 = vadd.f32 %v154_v22, %v127_v29 }
  0xf0   :  { %144 = vst.msk [vmem:[%s246_s3 + $0x18] sm:$0xff] %vm19_vm0, %v140_v28 }
  0xf1   :  { %142 = vst.msk [vmem:[%s246_s3 + $0x8] sm:$0xff] %vm19_vm0, %v138_v30 }

// kernel: isotropic_vig_forward.8
= control target key start
LH: loop header
LB: loop body
LE: loop exit
PB: predicated region body
PF: predicated region fallthrough
CT: control target
= control target key end

     0   :  { %v409_v1 = vmov 0   ;;  %v410_v35 = vmov 1983009808   ;;  %v303_v37 = vlaneseq  ;;  %s528_s1 = inlined_call_operand.vmem [shape: bf16[128,512], index: 1, kind: input, shape index: {}]   ;;  %s529_s0 = inlined_call_operand.vmem [shape: f32[2,128], index: 0, kind: input, shape index: {}]   ;;  %s530_s2 = inlined_call_operand.vmem [shape: f32[2,512], index: 2, kind: output, shape index: {}]  }
   0x1   :  { %v361_v0 = vld [vmem:[%s528_s1 + $0x4] ss:$16 sps:$4 sm:$0xff]   ;;  %244 = vmatprep.mubr.bf16.mxu0 %v409_v1  ;;  %285 = vmatprep.mubr.bf16.mxu1 %v409_v1  ;;  %v363_v2 = vld [vmem:[%s528_s1 + $0xc] ss:$16 sps:$4 sm:$0xff]   ;;  %v365_v3 = vld [vmem:[%s528_s1] ss:$16 sps:$4 sm:$0xff]   ;;  %v301_v36 = vunpack.c.l.s4 %v410_v35 }
   0x2   :  { %212 = vmatprep.subr.bf16.mxu0 %v361_v0  ;;  %v366_v4 = vld [vmem:[%s528_s1 + $0x8] ss:$16 sps:$4 sm:$0xff]   ;;  %253 = vmatprep.subr.bf16.mxu1 %v363_v2  ;;  %v367_v5 = vld [vmem:[%s528_s1 + $0x24] ss:$16 sps:$4 sm:$0xff]   ;;  %v369_v6 = vld [vmem:[%s528_s1 + $0x2c] ss:$16 sps:$4 sm:$0xff]  }
   0x3   :  { %213 = vmatpush1.bf16.msra.mxu0 %v365_v3  ;;  %254 = vmatpush1.bf16.msra.mxu1 %v366_v4  ;;  %v371_v7 = vld [vmem:[%s528_s1 + $0x20] ss:$16 sps:$4 sm:$0xff]   ;;  %v372_v8 = vld [vmem:[%s528_s1 + $0x28] ss:$16 sps:$4 sm:$0xff]   ;;  %v373_v9 = vld [vmem:[%s528_s1 + $0x44] ss:$16 sps:$4 sm:$0xff]   ;;  %v302_v38 = vunpack.c.0.s8 %v301_v36 }
   0x4   :  { %214 = vmatprep.subr.bf16.mxu0 %v367_v5  ;;  %255 = vmatprep.subr.bf16.mxu1 %v369_v6  ;;  %v375_v10 = vld [vmem:[%s528_s1 + $0x4c] ss:$16 sps:$4 sm:$0xff]   ;;  %v377_v11 = vld [vmem:[%s528_s1 + $0x40] ss:$16 sps:$4 sm:$0xff]   ;;  %v378_v12 = vld [vmem:[%s528_s1 + $0x48] ss:$16 sps:$4 sm:$0xff]  }
   0x5   :  { %v379_v13 = vld [vmem:[%s528_s1 + $0x64] ss:$16 sps:$4 sm:$0xff]   ;;  %v381_v14 = vld [vmem:[%s528_s1 + $0x6c] ss:$16 sps:$4 sm:$0xff]   ;;  %v383_v15 = vld [vmem:[%s528_s1 + $0x60] ss:$16 sps:$4 sm:$0xff]  }
   0x6   :  { %v384_v16 = vld [vmem:[%s528_s1 + $0x68] ss:$16 sps:$4 sm:$0xff]   ;;  %v385_v17 = vld [vmem:[%s528_s1 + $0x84] ss:$16 sps:$4 sm:$0xff]   ;;  %v387_v18 = vld [vmem:[%s528_s1 + $0x8c] ss:$16 sps:$4 sm:$0xff]  }
   0x7   :  { %215 = vmatpush1.bf16.msra.mxu0 %v371_v7  ;;  %256 = vmatpush1.bf16.msra.mxu1 %v372_v8  ;;  %v389_v19 = vld [vmem:[%s528_s1 + $0x80] ss:$16 sps:$4 sm:$0xff]   ;;  %v390_v20 = vld [vmem:[%s528_s1 + $0x88] ss:$16 sps:$4 sm:$0xff]   ;;  %v391_v21 = vld [vmem:[%s528_s1 + $0xa4] ss:$16 sps:$4 sm:$0xff]  }
   0x8   :  { %216 = vmatprep.subr.bf16.mxu0 %v373_v9  ;;  %257 = vmatprep.subr.bf16.mxu1 %v375_v10  ;;  %v393_v22 = vld [vmem:[%s528_s1 + $0xac] ss:$16 sps:$4 sm:$0xff]   ;;  %v395_v23 = vld [vmem:[%s528_s1 + $0xa0] ss:$16 sps:$4 sm:$0xff]   ;;  %v396_v24 = vld [vmem:[%s528_s1 + $0xa8] ss:$16 sps:$4 sm:$0xff]  }
   0x9   :  { %v397_v25 = vld [vmem:[%s528_s1 + $0xc4] ss:$16 sps:$4 sm:$0xff]   ;;  %v399_v26 = vld [vmem:[%s528_s1 + $0xcc] ss:$16 sps:$4 sm:$0xff]   ;;  %v401_v27 = vld [vmem:[%s528_s1 + $0xc0] ss:$16 sps:$4 sm:$0xff]  }
   0xa   :  { %v402_v28 = vld [vmem:[%s528_s1 + $0xc8] ss:$16 sps:$4 sm:$0xff]   ;;  %v403_v29 = vld [vmem:[%s528_s1 + $0xe4] ss:$16 sps:$4 sm:$0xff]   ;;  %v405_v30 = vld [vmem:[%s528_s1 + $0xec] ss:$16 sps:$4 sm:$0xff]  }
   0xb   :  { %217 = vmatpush1.bf16.msra.mxu0 %v377_v11  ;;  %258 = vmatpush1.bf16.msra.mxu1 %v378_v12  ;;  %v407_v31 = vld [vmem:[%s528_s1 + $0xe0] ss:$16 sps:$4 sm:$0xff]   ;;  %v408_v32 = vld [vmem:[%s528_s1 + $0xe8] ss:$16 sps:$4 sm:$0xff]   ;;  %v304_v39 = vshrl.u32 %v303_v37, 7 }
   0xc   :  { %218 = vmatprep.subr.bf16.mxu0 %v379_v13  ;;  %259 = vmatprep.subr.bf16.mxu1 %v381_v14  ;;  %v18_v33 = vld [vmem:[%s529_s0] sm:$0x3] }
   0xd   :  { %v19_v34 = vpack.c.bf16 %v18_v33, %v18_v33  ;;  %v305_v42 = vsub.s32 %v302_v38, %v304_v39 }
   0xf   :  { %219 = vmatpush1.bf16.msra.mxu0 %v383_v15  ;;  %260 = vmatpush1.bf16.msra.mxu1 %v384_v16 }
  0x10   :  { %220 = vmatprep.subr.bf16.mxu0 %v385_v17  ;;  %261 = vmatprep.subr.bf16.mxu1 %v387_v18 }
  0x13   :  { %221 = vmatpush1.bf16.msra.mxu0 %v389_v19  ;;  %262 = vmatpush1.bf16.msra.mxu1 %v390_v20 }
  0x14   :  { %222 = vmatprep.subr.bf16.mxu0 %v391_v21  ;;  %263 = vmatprep.subr.bf16.mxu1 %v393_v22 }
  0x17   :  { %223 = vmatpush1.bf16.msra.mxu0 %v395_v23  ;;  %264 = vmatpush1.bf16.msra.mxu1 %v396_v24 }
  0x18   :  { %224 = vmatprep.subr.bf16.mxu0 %v397_v25  ;;  %265 = vmatprep.subr.bf16.mxu1 %v399_v26 }
  0x1b   :  { %225 = vmatpush1.bf16.msra.mxu0 %v401_v27  ;;  %266 = vmatpush1.bf16.msra.mxu1 %v402_v28 }
  0x1c   :  { %226 = vmatprep.subr.bf16.mxu0 %v403_v29  ;;  %267 = vmatprep.subr.bf16.mxu1 %v405_v30 }
  0x1f   :  { %227 = vmatpush1.bf16.msra.mxu0 %v407_v31  ;;  %268 = vmatpush1.bf16.msra.mxu1 %v408_v32 }
  0x22   :  { %245 = vmatmul.mubr.bf16.vlgmr.msra.gmra.mrb[0].mxu0 %v19_v34  ;;  %286 = vmatmul.mubr.bf16.vlgmr.msra.gmra.mrb[0].mxu1 %v19_v34 }
  0xf5   :  { %v246_v40 = vpop.f32.mrb[0].mxu0  ;;  %v287_v41 = vpop.f32.mrb[0].mxu1 }
  0xf6   :  { %v248_v43 = vpop.f32.mrb[1].mxu0  ;;  %v289_v44 = vpop.f32.mrb[1].mxu1 }
  0xf7   :  { %v298_v45 = vcombine.low %v246_v40, %v248_v43  ;;  %v299_v46 = vcombine.low %v287_v41, %v289_v44  ;;  %v250_v47 = vpop.f32.mrb[2].mxu0  ;;  %v291_v48 = vpop.f32.mrb[2].mxu1 }
  0xf8   :  { %v251_v49 = vpop.f32.mrb[3].mxu0  ;;  %v292_v50 = vpop.f32.mrb[3].mxu1 }
  0xf9   :  { %v306_v51 = vrot.slane %v298_v45, %v305_v42  ;;  %v313_v52 = vrot.slane %v299_v46, %v305_v42 }
  0xfb   :  { %v314_v53 = vcombine.low %v306_v51, %v313_v52 }
  0xfd   :  { %322 = vst [vmem:[%s530_s2] sm:$0xff] %v314_v53 }

// kernel: isotropic_vig_forward.6
= control target key start
LH: loop header
LB: loop body
LE: loop exit
PB: predicated region body
PF: predicated region fallthrough
CT: control target
= control target key end

     0   :  { %vm54_vm0 = vcmask 1043456   ;;  %vm47_vm1 = vcmask 64512   ;;  %v1386_v8 = vmov 0.0   ;;  %vm1387_vm2 = vmmov 0   ;;  %s1777_s1 = inlined_call_operand.vmem [shape: bf16[8,8], index: 1, kind: input, shape index: {}]   ;;  %s1778_s0 = inlined_call_operand.vmem [shape: f32[32,8], index: 0, kind: input, shape index: {}]   ;;  %s1779_s2 = inlined_call_operand.vmem [shape: f32[1,8], index: 2, kind: input, shape index: {}]   ;;  %s1780_s3 = inlined_call_operand.vmem [shape: bf16[16,8], index: 3, kind: input, shape index: {}]   ;;  %s1781_s5 = inlined_call_operand.vmem [shape: bf16[8,32], index: 5, kind: input, shape index: {}]   ;;  %s1782_s4 = inlined_call_operand.vmem [shape: f32[1,8], index: 4, kind: input, shape index: {}]   ;;  %s1783_s7 = inlined_call_operand.vmem [shape: bf16[32,8], index: 7, kind: input, shape index: {}]   ;;  %s1784_s6 = inlined_call_operand.vmem [shape: f32[1,32], index: 6, kind: input, shape index: {}]   ;;  %s1785_s8 = inlined_call_operand.vmem [shape: f32[1,8], index: 8, kind: input, shape index: {}]   ;;  %s1786_s9 = inlined_call_operand.vmem [shape: f32[32,8], index: 9, kind: output, shape index: {}]  }
   0x1   :  { %v39_v0 = vld [vmem:[%s1777_s1] sm:$0xf]  ;;  %v1449_v2 = vld [vmem:[%s1778_s0 + $0x8] sm:$0xff]  ;;  %v1458_v5 = vld [vmem:[%s1778_s0 + $0x10] sm:$0xff]  ;;  %1272 = vmatprep.subr.bf16.mxu1 %v1386_v8  ;;  %1274 = vmatprep.mubr.msk.bf16.mxu1 %vm1387_vm2, %v1386_v8  ;;  %v109_v20 = vlaneseq  ;;  %vm167_vm5 = vcmask 130048  }
   0x2   :  { %v1444_v1 = vld [vmem:[%s1778_s0] sm:$0xff]  ;;  %1362 = vmatprep.subr.msk.bf16.mxu0 %vm54_vm0, %v39_v0  ;;  %v56_v3 = vsel %vm54_vm0, %v39_v0, 0  ;;  %v1463_v6 = vld [vmem:[%s1778_s0 + $0x18] sm:$0xff] }
   0x3   :  { %v37_v4 = vpack.c.bf16 %v1449_v2, %v1444_v1  ;;  %1267 = vmatpush3.bf16.msra.mxu0 %v56_v3  ;;  %v38_v7 = vpack.c.bf16 %v1463_v6, %v1458_v5  ;;  %v1186_v9 = vld [vmem:[%s1779_s2] ss:$0 sm:$0xff]  ;;  %v110_v21 = vshrl.u32 %v109_v20, 7  ;;  %v113_v22 = vand.u32 127, %v109_v20 }
   0x4   :  { %1278 = vmatprep.subr.bf16.mxu0 %v1386_v8 }
   0x5   :  { %1268 = vmatprep.mubr.msk.bf16.mxu0 %vm47_vm1, %v37_v4  ;;  %v111_v23 = vadd.s32 8, %v110_v21  ;;  %vm114_vm3 = vcmp.eq.s32.totalorder %v110_v21, %v113_v22  ;;  %v1513_v47 = vcvt.s32.f32 %v113_v22 }
   0x6   :  { %1269 = vmatmul.mubr.msk.bf16.vlgmr.msra.gmra.mrb[0].mxu0 %vm47_vm1, %v38_v7  ;;  %v1502_v24 = vsel %vm114_vm3, 1.0, %v1386_v8 }
   0x7   :  { %1280 = vmatprep.mubr.msk.bf16.mxu0 %vm1387_vm2, %v1386_v8  ;;  %vm115_vm4 = vcmp.eq.s32.totalorder %v111_v23, %v113_v22 }
   0x8   :  { %v1505_v26 = vsel %vm115_vm4, 1.0, %v1386_v8 }
  0xd9   :  { %v1270_v10 = vpop.f32.mrb[0].mxu0 }
  0xda   :  { %v1478_v11 = vadd.f32 %v1270_v10, %v1186_v9  ;;  %v92_v12 = vpop.f32.mrb[1].mxu0 }
  0xdb   :  { %v1271_v13 = vpop.f32.mrb[2].mxu0  ;;  %v1482_v16 = vadd.f32 %v1186_v9, %v92_v12 }
  0xdc   :  { %v1480_v14 = vadd.f32 %v1271_v13, %v1186_v9  ;;  %v95_v15 = vpop.f32.mrb[3].mxu0 }
  0xdd   :  { %v1484_v17 = vadd.f32 %v1186_v9, %v95_v15 }
  0xdf   :  { %v1488_v18 = vpack.c.bf16 %v1484_v17, %v1482_v16 }
  0xe1   :  { %1279 = vmatpush3.bf16.msra.mxu0 %v1488_v18  ;;  %v122_v19 = vsel %vm47_vm1, %v1488_v18, 0 }
  0xe2   :  { %1273 = vmatpush3.bf16.xpose.msra.mxu1 %v122_v19  ;;  %1290 = vmatprep.subr.bf16.mxu0 %v1386_v8 }
  0xe3   :  { %1284 = vmatprep.subr.bf16.mxu1 %v1386_v8 }
  0xe9   :  { %1275 = vmatmul.mubr.msk.bf16.vlgmr.msra.gmra.mrb[0].mxu1 %vm47_vm1, %v1488_v18 }
  0xea   :  { %1285 = vmatpush3.bf16.msra.mxu1 %v1488_v18  ;;  %1286 = vmatprep.mubr.msk.bf16.mxu1 %vm1387_vm2, %v1386_v8 }
  0xeb   :  { %1296 = vmatprep.subr.bf16.mxu1 %v1386_v8 }
 0x1bc   :  { %v158_v25 = vpop.f32.mrb[0].mxu1 }
 0x1bd   :  { %v165_v27 = vmul.f32 %v1502_v24, %v158_v25  ;;  %v1276_v28 = vpop.f32.mrb[1].mxu1  ;;  %v177_v40 = vmul.f32 2.0, %v158_v25 }
 0x1be   :  { %v161_v29 = vpop.f32.mrb[2].mxu1 }
 0x1bf   :  { %v166_v30 = vmul.f32 %v1505_v26, %v161_v29  ;;  %v1277_v31 = vpop.f32.mrb[3].mxu1  ;;  %v168_v32 = vsel %vm167_vm5, %v165_v27, 0.0  ;;  %v178_v42 = vmul.f32 2.0, %v161_v29 }
 0x1c1   :  { %v169_v33 = vsel %vm167_vm5, %v166_v30, 0.0 }
 0x1c2   :  { %v170_v34 = vadd.f32 %v169_v33, %v168_v32 }
 0x1c4   :  { %v171_v35 = vrot.slane %v170_v34, 4 }
 0x1c6   :  { %v172_v36 = vadd.f32 %v171_v35, %v170_v34 }
 0x1c8   :  { %v173_v37 = vrot.slane %v172_v36, 2 }
 0x1ca   :  { %v174_v38 = vadd.f32 %v173_v37, %v172_v36 }
 0x1cc   :  { %v175_v39 = vrot.slane %v174_v38, 1 }
 0x1ce   :  { %v176_v41 = vadd.f32 %v175_v39, %v174_v38 }
 0x1d0   :  { %v180_v43 = vsub.f32 %v176_v41, %v178_v42  ;;  %v179_v44 = vsub.f32 %v176_v41, %v177_v40 }
 0x1d2   :  { %v181_v45 = vsel %vm167_vm5, %v179_v44, inf  ;;  %v184_v46 = vsel %vm167_vm5, %v180_v43, inf }
 0x1d3   :  { %182 = vmin.xlane.f32.xlu0 %v181_v45 }
 0x1d7   :  { %185 = vmin.xlane.f32.xlu0 %v184_v46 }
 0x260   :  { %v183_v48 = vpop.xlane.xlu0 %182 }
 0x261   :  { %vm187_vm6 = vcmp.eq.f32.partialorder %v179_v44, %v183_v48 }
 0x262   :  { %v189_v49 = vsel %vm187_vm6, %v1513_v47, 16.0 }
 0x263   :  { %v191_v50 = vsel %vm167_vm5, %v189_v49, inf }
 0x264   :  { %192 = vmin.xlane.f32.xlu1 %v191_v50  ;;  %v186_v51 = vpop.xlane.xlu0 %185 }
 0x265   :  { %vm188_vm7 = vcmp.eq.f32.partialorder %v180_v43, %v186_v51  ;;  %v1569_v51 = vpack.c.bf16 %v1480_v14, %v1478_v11 }
 0x266   :  { %v190_v52 = vsel %vm188_vm7, %v1513_v47, 16.0 }
 0x267   :  { %v194_v53 = vsel %vm167_vm5, %v190_v52, inf }
 0x268   :  { %195 = vmin.xlane.f32.xlu1 %v194_v53 }
 0x2f1   :  { %v193_v54 = vpop.xlane.xlu1 %192 }
 0x2f2   :  { %vm197_vm8 = vcmp.eq.f32.partialorder %v1513_v47, %v193_v54 }
 0x2f3   :  { %v252_v55 = vsel %vm197_vm8, 1e+30, %v179_v44  ;;  %v1192_v58 = vsel %vm197_vm8, 1.0, %v1386_v8 }
 0x2f4   :  { %v254_v56 = vsel %vm167_vm5, %v252_v55, inf }
 0x2f5   :  { %255 = vmin.xlane.f32.xlu0 %v254_v56  ;;  %v196_v57 = vpop.xlane.xlu1 %195 }
 0x2f6   :  { %vm198_vm9 = vcmp.eq.f32.partialorder %v1513_v47, %v196_v57 }
 0x2f7   :  { %v1193_v59 = vsel %vm198_vm9, 1.0, %v1386_v8  ;;  %v253_v60 = vsel %vm198_vm9, 1e+30, %v180_v43 }
 0x2f8   :  { %v203_v61 = vpack.c.bf16 %v1193_v59, %v1192_v58  ;;  %v257_v62 = vsel %vm167_vm5, %v253_v60, inf }
 0x2f9   :  { %258 = vmin.xlane.f32.xlu1 %v257_v62 }
 0x2fa   :  { %1281 = vmatmul.mubr.msk.bf16.vlgmr.msra.gmra.mrb[4].mxu0 %vm167_vm5, %v203_v61 }
 0x2fb   :  { %1291 = vmatpush3.bf16.msra.mxu0 %v1488_v18  ;;  %1292 = vmatprep.mubr.msk.bf16.mxu0 %vm1387_vm2, %v1386_v8 }
 0x2fc   :  { %1302 = vmatprep.subr.bf16.mxu0 %v1386_v8 }
 0x382   :  { %v256_v63 = vpop.xlane.xlu0 %255 }
 0x383   :  { %vm260_vm10 = vcmp.eq.f32.partialorder %v252_v55, %v256_v63 }
 0x384   :  { %v262_v0 = vsel %vm260_vm10, %v1513_v47, 16.0 }
 0x385   :  { %v264_v3 = vsel %vm167_vm5, %v262_v0, inf }
 0x386   :  { %v259_v4 = vpop.xlane.xlu1 %258  ;;  %265 = vmin.xlane.f32.xlu0 %v264_v3 }
 0x387   :  { %vm261_vm11 = vcmp.eq.f32.partialorder %v253_v60, %v259_v4 }
 0x388   :  { %v263_v7 = vsel %vm261_vm11, %v1513_v47, 16.0 }
 0x389   :  { %v267_v9 = vsel %vm167_vm5, %v263_v7, inf }
 0x38a   :  { %268 = vmin.xlane.f32.xlu1 %v267_v9 }
 0x3cd   :  { %v241_v10 = vpop.f32.mrb[4].mxu0 }
 0x3ce   :  { %v1282_v12 = vpop.f32.mrb[5].mxu0  ;;  %v248_v36 = vsub.f32 %v241_v10, %v1482_v16 }
 0x3cf   :  { %v244_v13 = vpop.f32.mrb[6].mxu0 }
 0x3d0   :  { %v1283_v15 = vpop.f32.mrb[7].mxu0  ;;  %v249_v37 = vsub.f32 %v244_v13, %v1484_v17  ;;  %v250_v39 = vmax.f32 %v248_v36, 0.0 }
 0x3d2   :  { %v251_v43 = vmax.f32 %v249_v37, 0.0 }
 0x413   :  { %v266_v19 = vpop.xlane.xlu0 %265 }
 0x414   :  { %vm270_vm12 = vcmp.eq.f32.partialorder %v1513_v47, %v266_v19 }
 0x415   :  { %v1535_v20 = vsel %vm270_vm12, 1e+30, %v252_v55  ;;  %v1195_v23 = vsel %vm270_vm12, 1.0, %v1386_v8  ;;  %v472_v55 = vsel %vm47_vm1, %v1569_v51, 0 }
 0x416   :  { %v327_v21 = vsel %vm167_vm5, %v1535_v20, inf }
 0x417   :  { %v269_v22 = vpop.xlane.xlu1 %268  ;;  %328 = vmin.xlane.f32.xlu0 %v327_v21 }
 0x418   :  { %vm271_vm13 = vcmp.eq.f32.partialorder %v1513_v47, %v269_v22 }
 0x419   :  { %v1196_v25 = vsel %vm271_vm13, 1.0, %v1386_v8  ;;  %v1542_v27 = vsel %vm271_vm13, 1e+30, %v253_v60 }
 0x41a   :  { %v276_v28 = vpack.c.bf16 %v1196_v25, %v1195_v23  ;;  %v330_v29 = vsel %vm167_vm5, %v1542_v27, inf }
 0x41b   :  { %331 = vmin.xlane.f32.xlu1 %v330_v29 }
 0x41c   :  { %1287 = vmatmul.mubr.msk.bf16.vlgmr.msra.gmra.mrb[4].mxu1 %vm167_vm5, %v276_v28 }
 0x41d   :  { %1297 = vmatpush3.bf16.msra.mxu1 %v1488_v18  ;;  %1298 = vmatprep.mubr.msk.bf16.mxu1 %vm1387_vm2, %v1386_v8 }
 0x41e   :  { %1308 = vmatprep.subr.bf16.mxu1 %v1386_v8 }
 0x4a4   :  { %v329_v30 = vpop.xlane.xlu0 %328 }
 0x4a5   :  { %vm333_vm14 = vcmp.eq.f32.partialorder %v1535_v20, %v329_v30 }
 0x4a6   :  { %v335_v31 = vsel %vm333_vm14, %v1513_v47, 16.0 }
 0x4a7   :  { %v337_v32 = vsel %vm167_vm5, %v335_v31, inf }
 0x4a8   :  { %v332_v33 = vpop.xlane.xlu1 %331  ;;  %338 = vmin.xlane.f32.xlu0 %v337_v32 }
 0x4a9   :  { %vm334_vm15 = vcmp.eq.f32.partialorder %v1542_v27, %v332_v33 }
 0x4aa   :  { %v336_v34 = vsel %vm334_vm15, %v1513_v47, 16.0 }
 0x4ab   :  { %v340_v35 = vsel %vm167_vm5, %v336_v34, inf }
 0x4ac   :  { %341 = vmin.xlane.f32.xlu1 %v340_v35 }
 0x4ef   :  { %v314_v38 = vpop.f32.mrb[4].mxu1 }
 0x4f0   :  { %v321_v40 = vsub.f32 %v314_v38, %v1482_v16  ;;  %v1288_v41 = vpop.f32.mrb[5].mxu1 }
 0x4f1   :  { %v317_v42 = vpop.f32.mrb[6].mxu1 }
 0x4f2   :  { %v323_v44 = vmax.f32 %v250_v39, %v321_v40  ;;  %v322_v45 = vsub.f32 %v317_v42, %v1484_v17  ;;  %v1289_v46 = vpop.f32.mrb[7].mxu1 }
 0x4f4   :  { %v324_v48 = vmax.f32 %v251_v43, %v322_v45 }
 0x535   :  { %v1561_v49 = vpop.xlane.xlu0 %338 }
 0x536   :  { %vm343_vm3 = vcmp.eq.f32.partialorder %v1513_v47, %v1561_v49 }
 0x537   :  { %v1198_v52 = vsel %vm343_vm3, 1.0, %v1386_v8 }
 0x539   :  { %v1565_v50 = vpop.xlane.xlu1 %341 }
 0x53a   :  { %vm344_vm4 = vcmp.eq.f32.partialorder %v1513_v47, %v1565_v50 }
 0x53b   :  { %v1199_v53 = vsel %vm344_vm4, 1.0, %v1386_v8 }
 0x53c   :  { %v349_v54 = vpack.c.bf16 %v1199_v53, %v1198_v52 }
 0x53e   :  { %1293 = vmatmul.mubr.msk.bf16.vlgmr.msra.gmra.mrb[8].mxu0 %vm167_vm5, %v349_v54 }
 0x53f   :  { %1303 = vmatpush3.bf16.xpose.msra.mxu0 %v472_v55  ;;  %1304 = vmatprep.mubr.msk.bf16.mxu0 %vm1387_vm2, %v1386_v8 }
 0x540   :  { %1314 = vmatprep.subr.bf16.mxu0 %v1386_v8 }
 0x546   :  { %1305 = vmatmul.mubr.msk.bf16.vlgmr.msra.gmra.mrb[12].mxu0 %vm47_vm1, %v1569_v51 }
 0x547   :  { %1315 = vmatpush3.bf16.msra.mxu0 %v1569_v51  ;;  %1316 = vmatprep.mubr.msk.bf16.mxu0 %vm1387_vm2, %v1386_v8 }
 0x548   :  { %1326 = vmatprep.subr.bf16.mxu0 %v1386_v8 }
 0x611   :  { %v387_v56 = vpop.f32.mrb[8].mxu0 }
 0x612   :  { %v394_v57 = vsub.f32 %v387_v56, %v1482_v16  ;;  %v1294_v58 = vpop.f32.mrb[9].mxu0 }
 0x613   :  { %v390_v59 = vpop.f32.mrb[10].mxu0 }
 0x614   :  { %v1594_v60 = vmax.f32 %v323_v44, %v394_v57  ;;  %v395_v61 = vsub.f32 %v390_v59, %v1484_v17  ;;  %v1295_v62 = vpop.f32.mrb[11].mxu0 }
 0x616   :  { %v1597_v63 = vmax.f32 %v324_v48, %v395_v61 }
 0x619   :  { %v508_v0 = vpop.f32.mrb[12].mxu0 }
 0x61a   :  { %v515_v3 = vmul.f32 %v1502_v24, %v508_v0  ;;  %v1306_v4 = vpop.f32.mrb[13].mxu0  ;;  %v526_v28 = vmul.f32 2.0, %v508_v0 }
 0x61b   :  { %v511_v7 = vpop.f32.mrb[14].mxu0 }
 0x61c   :  { %v516_v9 = vmul.f32 %v1505_v26, %v511_v7  ;;  %v1307_v10 = vpop.f32.mrb[15].mxu0  ;;  %v517_v12 = vsel %vm167_vm5, %v515_v3, 0.0  ;;  %v527_v30 = vmul.f32 2.0, %v511_v7 }
 0x61e   :  { %v518_v13 = vsel %vm167_vm5, %v516_v9, 0.0 }
 0x61f   :  { %v519_v15 = vadd.f32 %v518_v13, %v517_v12 }
 0x621   :  { %v520_v19 = vrot.slane %v519_v15, 4 }
 0x623   :  { %v521_v21 = vadd.f32 %v520_v19, %v519_v15 }
 0x625   :  { %v522_v22 = vrot.slane %v521_v21, 2 }
 0x627   :  { %v523_v23 = vadd.f32 %v522_v22, %v521_v21  ;;  %v399_v22 = vsel %vm344_vm4, 1e+30, %v1542_v27 }
 0x629   :  { %v524_v25 = vrot.slane %v523_v23, 1 }
 0x62b   :  { %v525_v29 = vadd.f32 %v524_v25, %v523_v23  ;;  %v398_v23 = vsel %vm343_vm3, 1e+30, %v1535_v20  ;;  %v403_v25 = vsel %vm167_vm5, %v399_v22, inf }
 0x62d   :  { %v529_v31 = vsub.f32 %v525_v29, %v527_v30  ;;  %v528_v24 = vsub.f32 %v525_v29, %v526_v28  ;;  %v400_v28 = vsel %vm167_vm5, %v398_v23, inf }
 0x62f   :  { %v533_v32 = vsel %vm167_vm5, %v529_v31, inf  ;;  %v530_v26 = vsel %vm167_vm5, %v528_v24, inf }
 0x630   :  { %534 = vmin.xlane.f32.xlu1 %v533_v32  ;;  %531 = vmin.xlane.f32.xlu0 %v530_v26 }
 0x6bd   :  { %v535_v33 = vpop.xlane.xlu1 %534  ;;  %v532_v34 = vpop.xlane.xlu0 %531 }
 0x6be   :  { %vm537_vm6 = vcmp.eq.f32.partialorder %v529_v31, %v535_v33  ;;  %vm536_vm7 = vcmp.eq.f32.partialorder %v528_v24, %v532_v34 }
 0x6bf   :  { %v539_v35 = vsel %vm537_vm6, %v1513_v47, 16.0  ;;  %v538_v36 = vsel %vm536_vm7, %v1513_v47, 16.0 }
 0x6c0   :  { %v543_v37 = vsel %vm167_vm5, %v539_v35, inf  ;;  %v540_v38 = vsel %vm167_vm5, %v538_v36, inf }
 0x6c1   :  { %544 = vmin.xlane.f32.xlu1 %v543_v37  ;;  %541 = vmin.xlane.f32.xlu0 %v540_v38 }
 0x74e   :  { %v545_v39 = vpop.xlane.xlu1 %544  ;;  %v542_v40 = vpop.xlane.xlu0 %541 }
 0x74f   :  { %vm547_vm8 = vcmp.eq.f32.partialorder %v1513_v47, %v545_v39  ;;  %vm546_vm9 = vcmp.eq.f32.partialorder %v1513_v47, %v542_v40 }
 0x750   :  { %v1612_v41 = vsel %vm547_vm8, 1.0, %v1386_v8  ;;  %v602_v42 = vsel %vm547_vm8, 1e+30, %v529_v31  ;;  %v1615_v43 = vsel %vm546_vm9, 1.0, %v1386_v8  ;;  %v601_v44 = vsel %vm546_vm9, 1e+30, %v528_v24 }
 0x751   :  { %v552_v45 = vpack.c.bf16 %v1612_v41, %v1615_v43  ;;  %v606_v46 = vsel %vm167_vm5, %v602_v42, inf  ;;  %v603_v48 = vsel %vm167_vm5, %v601_v44, inf }
 0x752   :  { %607 = vmin.xlane.f32.xlu1 %v606_v46  ;;  %604 = vmin.xlane.f32.xlu0 %v603_v48 }
 0x7df   :  { %v608_v52 = vpop.xlane.xlu1 %607  ;;  %v605_v53 = vpop.xlane.xlu0 %604 }
 0x7e0   :  { %vm610_vm10 = vcmp.eq.f32.partialorder %v602_v42, %v608_v52  ;;  %vm609_vm11 = vcmp.eq.f32.partialorder %v601_v44, %v605_v53 }
 0x7e1   :  { %v612_v54 = vsel %vm610_vm10, %v1513_v47, 16.0  ;;  %v611_v55 = vsel %vm609_vm11, %v1513_v47, 16.0 }
 0x7e2   :  { %v616_v56 = vsel %vm167_vm5, %v612_v54, inf  ;;  %v613_v57 = vsel %vm167_vm5, %v611_v55, inf }
 0x7e3   :  { %617 = vmin.xlane.f32.xlu1 %v616_v56  ;;  %614 = vmin.xlane.f32.xlu0 %v613_v57 }
 0x870   :  { %v618_v58 = vpop.xlane.xlu1 %617  ;;  %v615_v59 = vpop.xlane.xlu0 %614 }
 0x871   :  { %vm620_vm12 = vcmp.eq.f32.partialorder %v1513_v47, %v618_v58  ;;  %vm619_vm13 = vcmp.eq.f32.partialorder %v1513_v47, %v615_v59 }
 0x872   :  { %v1209_v61 = vsel %vm620_vm12, 1.0, %v1386_v8  ;;  %v675_v62 = vsel %vm620_vm12, 1e+30, %v602_v42  ;;  %v1208_v0 = vsel %vm619_vm13, 1.0, %v1386_v8  ;;  %v674_v3 = vsel %vm619_vm13, 1e+30, %v601_v44 }
 0x873   :  { %v625_v4 = vpack.c.bf16 %v1209_v61, %v1208_v0  ;;  %v679_v7 = vsel %vm167_vm5, %v675_v62, inf  ;;  %v676_v9 = vsel %vm167_vm5, %v674_v3, inf }
 0x874   :  { %680 = vmin.xlane.f32.xlu1 %v679_v7  ;;  %677 = vmin.xlane.f32.xlu0 %v676_v9 }
 0x875   :  { %1317 = vmatmul.mubr.msk.bf16.vlgmr.msra.gmra.mrb[16].mxu0 %vm167_vm5, %v625_v4 }
 0x876   :  { %1327 = vmatpush3.bf16.msra.mxu0 %v1569_v51  ;;  %1328 = vmatprep.mubr.msk.bf16.mxu0 %vm1387_vm2, %v1386_v8 }
 0x901   :  { %v681_v10 = vpop.xlane.xlu1 %680  ;;  %v678_v12 = vpop.xlane.xlu0 %677 }
 0x902   :  { %vm683_vm14 = vcmp.eq.f32.partialorder %v675_v62, %v681_v10  ;;  %vm682_vm15 = vcmp.eq.f32.partialorder %v674_v3, %v678_v12 }
 0x903   :  { %v685_v13 = vsel %vm683_vm14, %v1513_v47, 16.0  ;;  %v684_v15 = vsel %vm682_vm15, %v1513_v47, 16.0 }
 0x904   :  { %v689_v19 = vsel %vm167_vm5, %v685_v13, inf  ;;  %v686_v21 = vsel %vm167_vm5, %v684_v15, inf }
 0x905   :  { %690 = vmin.xlane.f32.xlu1 %v689_v19  ;;  %687 = vmin.xlane.f32.xlu0 %v686_v21 }
 0x909   :  { %404 = vmin.xlane.f32.xlu1 %v403_v25  ;;  %401 = vmin.xlane.f32.xlu0 %v400_v28 }
 0x948   :  { %v1649_v29 = vpop.f32.mrb[16].mxu0 }
 0x949   :  { %v1318_v30 = vpop.f32.mrb[17].mxu0 }
 0x94a   :  { %v1651_v31 = vpop.f32.mrb[18].mxu0 }
 0x94b   :  { %v1319_v24 = vpop.f32.mrb[19].mxu0 }
 0x992   :  { %v691_v32 = vpop.xlane.xlu1 %690  ;;  %v688_v50 = vpop.xlane.xlu0 %687 }
 0x993   :  { %vm693_vm4 = vcmp.eq.f32.partialorder %v1513_v47, %v691_v32  ;;  %vm692_vm6 = vcmp.eq.f32.partialorder %v1513_v47, %v688_v50  ;;  %v823_v50 = vld [vmem:[%s1780_s3 + $0x4] sm:$0xf] }
 0x994   :  { %v1212_v20 = vsel %vm693_vm4, 1.0, %v1386_v8  ;;  %v1211_v27 = vsel %vm692_vm6, 1.0, %v1386_v8  ;;  %v748_v49 = vsel %vm693_vm4, 1e+30, %v675_v62  ;;  %v747_v26 = vsel %vm692_vm6, 1e+30, %v674_v3 }
 0x995   :  { %v698_v33 = vpack.c.bf16 %v1212_v20, %v1211_v27  ;;  %v752_v34 = vsel %vm167_vm5, %v748_v49, inf  ;;  %v749_v35 = vsel %vm167_vm5, %v747_v26, inf }
 0x996   :  { %753 = vmin.xlane.f32.xlu1 %v752_v34  ;;  %v405_v36 = vpop.xlane.xlu1 %404  ;;  %750 = vmin.xlane.f32.xlu0 %v749_v35  ;;  %v402_v37 = vpop.xlane.xlu0 %401 }
 0x997   :  { %vm407_vm3 = vcmp.eq.f32.partialorder %v399_v22, %v405_v36  ;;  %vm406_vm7 = vcmp.eq.f32.partialorder %v398_v23, %v402_v37 }
 0x998   :  { %v409_v38 = vsel %vm407_vm3, %v1513_v47, 16.0  ;;  %v408_v39 = vsel %vm406_vm7, %v1513_v47, 16.0 }
 0x999   :  { %v413_v40 = vsel %vm167_vm5, %v409_v38, inf  ;;  %v410_v42 = vsel %vm167_vm5, %v408_v39, inf }
 0x99a   :  { %414 = vmin.xlane.f32.xlu1 %v413_v40  ;;  %411 = vmin.xlane.f32.xlu0 %v410_v42 }
 0xa23   :  { %v754_v44 = vpop.xlane.xlu1 %753  ;;  %v751_v46 = vpop.xlane.xlu0 %750 }
 0xa24   :  { %vm756_vm8 = vcmp.eq.f32.partialorder %v748_v49, %v754_v44  ;;  %vm755_vm9 = vcmp.eq.f32.partialorder %v747_v26, %v751_v46  ;;  %v820_v26 = vld [vmem:[%s1780_s3] sm:$0xf] }
 0xa25   :  { %v758_v48 = vsel %vm756_vm8, %v1513_v47, 16.0  ;;  %v757_v52 = vsel %vm755_vm9, %v1513_v47, 16.0  ;;  %v883_v46 = vsel %vm54_vm0, %v820_v26, 0 }
 0xa26   :  { %v762_v53 = vsel %vm167_vm5, %v758_v48, inf  ;;  %v759_v54 = vsel %vm167_vm5, %v757_v52, inf  ;;  %v1221_v48 = vld [vmem:[%s1782_s4] ss:$0 sm:$0xff] }
 0xa27   :  { %763 = vmin.xlane.f32.xlu1 %v762_v53  ;;  %v415_v55 = vpop.xlane.xlu1 %414  ;;  %760 = vmin.xlane.f32.xlu0 %v759_v54  ;;  %v412_v56 = vpop.xlane.xlu0 %411 }
 0xa28   :  { %vm417_vm10 = vcmp.eq.f32.partialorder %v1513_v47, %v415_v55  ;;  %vm416_vm11 = vcmp.eq.f32.partialorder %v1513_v47, %v412_v56 }
 0xa29   :  { %v1202_v57 = vsel %vm417_vm10, 1.0, %v1386_v8  ;;  %v1201_v58 = vsel %vm416_vm11, 1.0, %v1386_v8 }
 0xa2a   :  { %v422_v59 = vpack.c.bf16 %v1202_v57, %v1201_v58 }
 0xa2c   :  { %1299 = vmatmul.mubr.msk.bf16.vlgmr.msra.gmra.mrb[8].mxu1 %vm167_vm5, %v422_v59 }
 0xa2d   :  { %1309 = vmatpush3.bf16.msra.mxu1 %v1569_v51  ;;  %1310 = vmatprep.mubr.msk.bf16.mxu1 %vm1387_vm2, %v1386_v8 }
 0xa2e   :  { %1320 = vmatprep.subr.bf16.mxu1 %v1386_v8 }
 0xa34   :  { %1311 = vmatmul.mubr.msk.bf16.vlgmr.msra.gmra.mrb[12].mxu1 %vm167_vm5, %v552_v45 }
 0xa35   :  { %1321 = vmatpush3.bf16.msra.mxu1 %v1569_v51  ;;  %1322 = vmatprep.mubr.msk.bf16.mxu1 %vm1387_vm2, %v1386_v8 }
 0xa36   :  { %1363 = vmatprep.subr.msk.bf16.mxu1 %vm54_vm0, %v823_v50 }
 0xa3c   :  { %1323 = vmatmul.mubr.msk.bf16.vlgmr.msra.gmra.mrb[16].mxu1 %vm167_vm5, %v698_v33 }
 0xab4   :  { %v764_v61 = vpop.xlane.xlu1 %763  ;;  %v761_v62 = vpop.xlane.xlu0 %760 }
 0xab5   :  { %vm766_vm12 = vcmp.eq.f32.partialorder %v1513_v47, %v764_v61  ;;  %vm765_vm13 = vcmp.eq.f32.partialorder %v1513_v47, %v761_v62 }
 0xab6   :  { %v1215_v0 = vsel %vm766_vm12, 1.0, %v1386_v8  ;;  %v1214_v3 = vsel %vm765_vm13, 1.0, %v1386_v8 }
 0xab7   :  { %v771_v41 = vpack.c.bf16 %v1215_v0, %v1214_v3 }
 0xab9   :  { %1329 = vmatmul.mubr.msk.bf16.vlgmr.msra.gmra.mrb[20].mxu0 %vm167_vm5, %v771_v41 }
 0xaff   :  { %v460_v43 = vpop.f32.mrb[8].mxu1 }
 0xb00   :  { %v467_v45 = vsub.f32 %v460_v43, %v1482_v16  ;;  %v1300_v4 = vpop.f32.mrb[9].mxu1  ;;  %v670_v16 = vsub.f32 %v1649_v29, %v1478_v11  ;;  %v831_v29 = vsel %vm54_vm0, %v823_v50, 0 }
 0xb01   :  { %v463_v7 = vpop.f32.mrb[10].mxu1  ;;  %1333 = vmatpush3.bf16.msra.mxu1 %v831_v29 }
 0xb02   :  { %v469_v9 = vmax.f32 %v1594_v60, %v467_v45  ;;  %v468_v10 = vsub.f32 %v463_v7, %v1484_v17  ;;  %v1301_v12 = vpop.f32.mrb[11].mxu1  ;;  %v671_v17 = vsub.f32 %v1651_v31, %v1480_v14  ;;  %1364 = vmatprep.subr.msk.bf16.mxu1 %vm54_vm0, %v820_v26 }
 0xb04   :  { %v470_v13 = vmax.f32 %v1597_v63, %v468_v10 }
 0xb06   :  { %v821_v47 = vpack.c.bf16 %v470_v13, %v469_v9 }
 0xb07   :  { %v590_v15 = vpop.f32.mrb[12].mxu1 }
 0xb08   :  { %v597_v19 = vsub.f32 %v590_v15, %v1478_v11  ;;  %v1312_v8 = vpop.f32.mrb[13].mxu1  ;;  %1334 = vmatprep.mubr.msk.bf16.mxu1 %vm47_vm1, %v821_v47 }
 0xb09   :  { %v593_v21 = vpop.f32.mrb[14].mxu1 }
 0xb0a   :  { %v599_v22 = vmax.f32 %v597_v19, 0.0  ;;  %v598_v23 = vsub.f32 %v593_v21, %v1480_v14  ;;  %v1313_v60 = vpop.f32.mrb[15].mxu1 }
 0xb0c   :  { %v672_v25 = vmax.f32 %v599_v22, %v670_v16  ;;  %v600_v63 = vmax.f32 %v598_v23, 0.0 }
 0xb0e   :  { %v673_v28 = vmax.f32 %v600_v63, %v671_v17 }
 0xb0f   :  { %v736_v30 = vpop.f32.mrb[16].mxu1 }
 0xb10   :  { %v743_v24 = vsub.f32 %v736_v30, %v1478_v11  ;;  %v1324_v32 = vpop.f32.mrb[17].mxu1 }
 0xb11   :  { %v739_v20 = vpop.f32.mrb[18].mxu1 }
 0xb12   :  { %v745_v27 = vmax.f32 %v672_v25, %v743_v24  ;;  %v744_v49 = vsub.f32 %v739_v20, %v1480_v14  ;;  %v1325_v31 = vpop.f32.mrb[19].mxu1 }
 0xb14   :  { %v746_v33 = vmax.f32 %v673_v28, %v744_v49 }
 0xb8c   :  { %v809_v34 = vpop.f32.mrb[20].mxu0 }
 0xb8d   :  { %v816_v35 = vsub.f32 %v809_v34, %v1478_v11  ;;  %v1330_v36 = vpop.f32.mrb[21].mxu0  ;;  %v951_v11 = vld [vmem:[%s1781_s5] sm:$0xf] }
 0xb8e   :  { %v812_v37 = vpop.f32.mrb[22].mxu0  ;;  %1365 = vmatprep.subr.msk.bf16.mxu0 %vm54_vm0, %v951_v11 }
 0xb8f   :  { %v818_v38 = vmax.f32 %v745_v27, %v816_v35  ;;  %v817_v39 = vsub.f32 %v812_v37, %v1480_v14  ;;  %v1331_v40 = vpop.f32.mrb[23].mxu0  ;;  %v966_v14 = vsel %vm54_vm0, %v951_v11, 0  ;;  %vm1078_vm0 = vcmask 261120  }
 0xb90   :  { %1345 = vmatpush3.bf16.msra.mxu0 %v966_v14 }
 0xb91   :  { %v819_v42 = vmax.f32 %v746_v33, %v817_v39 }
 0xb93   :  { %v822_v44 = vpack.c.bf16 %v819_v42, %v818_v38 }
 0xb95   :  { %1335 = vmatmul.mubr.msk.bf16.vlgmr.msra.gmra.mrb[20].mxu1 %vm47_vm1, %v822_v44 }
 0xb96   :  { %1339 = vmatpush3.bf16.msra.mxu1 %v883_v46  ;;  %1340 = vmatprep.mubr.msk.bf16.mxu1 %vm47_vm1, %v1488_v18 }
 0xba1   :  { %1341 = vmatmul.mubr.msk.bf16.vlgmr.msra.gmra.mrb[20].mxu1 %vm47_vm1, %v1569_v51 }
 0xc74   :  { %v1342_v52 = vpop.f32.mrb[20].mxu1 }
 0xc75   :  { %v919_v53 = vpop.f32.mrb[21].mxu1  ;;  %v943_v55 = vadd.f32 %v1342_v52, %v1221_v48 }
 0xc76   :  { %v941_v54 = vadd.f32 %v1221_v48, %v919_v53  ;;  %v1343_v18 = vpop.f32.mrb[22].mxu1 }
 0xc77   :  { %v944_v56 = vadd.f32 %v1343_v18, %v1221_v48  ;;  %v922_v51 = vpop.f32.mrb[23].mxu1  ;;  %v1737_v62 = vadd.f32 %v943_v55, %v1458_v5  ;;  %v1222_v5 = vld [vmem:[%s1784_s6] ss:$0 sm:$0xff] }
 0xc78   :  { %v942_v57 = vadd.f32 %v1221_v48, %v922_v51  ;;  %v1731_v59 = vadd.f32 %v941_v54, %v1444_v1  ;;  %v1368_v1 = vld [vmem:[%s1783_s7] sm:$0xff]  }
 0xc79   :  { %v1728_v58 = vadd.f32 %v944_v56, %v1463_v6  ;;  %1350 = vmatprep.subr.bf16.mxu0 %v1368_v1  ;;  %v1225_v48 = vld [vmem:[%s1785_s8] ss:$0 sm:$0xff] }
 0xc7a   :  { %v1734_v61 = vadd.f32 %v942_v57, %v1449_v2  ;;  %v1369_v2 = vld [vmem:[%s1783_s7 + $0x8] sm:$0xff]  }
 0xc7b   :  { %v950_v3 = vpack.c.bf16 %v1728_v58, %v1737_v62 }
 0xc7c   :  { %v949_v0 = vpack.c.bf16 %v1734_v61, %v1731_v59 }
 0xc7e   :  { %1346 = vmatprep.mubr.msk.bf16.mxu0 %vm47_vm1, %v949_v0 }
 0xc7f   :  { %1347 = vmatmul.mubr.msk.bf16.vlgmr.msra.gmra.mrb[24].mxu0 %vm47_vm1, %v950_v3 }
 0xc80   :  { %1351 = vmatpush3.bf16.msra.mxu0 %v1368_v1 }
 0xc81   :  { %1352 = vmatprep.subr.bf16.mxu0 %v1369_v2 }
 0xc84   :  { %1353 = vmatpush3.bf16.msra.mxu0 %v1369_v2 }
 0xd52   :  { %v1348_v6 = vpop.f32.mrb[24].mxu0 }
 0xd53   :  { %v1011_v41 = vadd.f32 %v1348_v6, %v1222_v5  ;;  %v1002_v43 = vpop.f32.mrb[25].mxu0 }
 0xd54   :  { %v1003_v45 = vadd.f32 %v1222_v5, %v1002_v43  ;;  %v1349_v4 = vpop.f32.mrb[26].mxu0 }
 0xd55   :  { %v1019_v7 = vmul.f32 %v1011_v41, %v1011_v41  ;;  %v1014_v9 = vadd.f32 %v1349_v4, %v1222_v5  ;;  %v1005_v10 = vpop.f32.mrb[27].mxu0 }
 0xd56   :  { %v1017_v12 = vmul.f32 %v1003_v45, %v1003_v45  ;;  %v1006_v13 = vadd.f32 %v1222_v5, %v1005_v10 }
 0xd57   :  { %v1023_v47 = vmul.f32 %v1019_v7, %v1011_v41  ;;  %v1020_v15 = vmul.f32 %v1014_v9, %v1014_v9 }
 0xd58   :  { %v1021_v19 = vmul.f32 %v1017_v12, %v1003_v45  ;;  %v1018_v8 = vmul.f32 %v1006_v13, %v1006_v13 }
 0xd59   :  { %v1027_v21 = vmul.f32 0.044715, %v1023_v47  ;;  %v1024_v16 = vmul.f32 %v1020_v15, %v1014_v9 }
 0xd5a   :  { %v1025_v22 = vmul.f32 0.044715, %v1021_v19  ;;  %v1022_v23 = vmul.f32 %v1018_v8, %v1006_v13 }
 0xd5b   :  { %v1031_v60 = vadd.f32 %v1027_v21, %v1011_v41  ;;  %v1028_v17 = vmul.f32 0.044715, %v1024_v16 }
 0xd5c   :  { %v1029_v25 = vadd.f32 %v1025_v22, %v1003_v45  ;;  %v1026_v63 = vmul.f32 0.044715, %v1022_v23 }
 0xd5d   :  { %v1035_v28 = vmul.f32 0.7978846, %v1031_v60  ;;  %v1032_v30 = vadd.f32 %v1028_v17, %v1014_v9 }
 0xd5e   :  { %v1033_v24 = vmul.f32 0.7978846, %v1029_v25  ;;  %v1030_v32 = vadd.f32 %v1026_v63, %v1006_v13 }
 0xd5f   :  { %1370 = vtanh.f32 %v1035_v28  ;;  %v1036_v50 = vmul.f32 0.7978846, %v1032_v30 }
 0xd60   :  { %1372 = vtanh.f32 %v1033_v24  ;;  %v1034_v20 = vmul.f32 0.7978846, %v1030_v32 }
 0xd61   :  { %1374 = vtanh.f32 %v1036_v50 }
 0xd62   :  { %1376 = vtanh.f32 %v1034_v20 }
 0xd69   :  { %v1371_v29 = vpop.eup %1370 }
 0xd6a   :  { %v1373_v27 = vpop.eup %1372  ;;  %v1043_v49 = vadd.f32 1.0, %v1371_v29 }
 0xd6b   :  { %v1375_v31 = vpop.eup %1374  ;;  %v1041_v26 = vadd.f32 1.0, %v1373_v27 }
 0xd6c   :  { %v1377_v33 = vpop.eup %1376  ;;  %v1047_v34 = vmul.f32 0.5, %v1043_v49  ;;  %v1044_v35 = vadd.f32 1.0, %v1375_v31 }
 0xd6d   :  { %v1045_v36 = vmul.f32 0.5, %v1041_v26  ;;  %v1042_v37 = vadd.f32 1.0, %v1377_v33 }
 0xd6e   :  { %v1048_v38 = vmul.f32 0.5, %v1044_v35  ;;  %v1051_v40 = vmul.f32 %v1047_v34, %v1011_v41 }
 0xd6f   :  { %v1046_v39 = vmul.f32 0.5, %v1042_v37  ;;  %v1049_v44 = vmul.f32 %v1045_v36, %v1003_v45 }
 0xd70   :  { %v1052_v42 = vmul.f32 %v1048_v38, %v1014_v9 }
 0xd71   :  { %v1050_v46 = vmul.f32 %v1046_v39, %v1006_v13 }
 0xd72   :  { %v1054_v11 = vpack.c.bf16 %v1052_v42, %v1051_v40 }
 0xd73   :  { %v1053_v14 = vpack.c.bf16 %v1050_v46, %v1049_v44 }
 0xd75   :  { %1354 = vmatprep.mubr.msk.bf16.mxu0 %vm1078_vm0, %v1053_v14 }
 0xd76   :  { %1355 = vmatmul.mubr.msk.bf16.vlgmr.msra.gmra.mrb[28].mxu0 %vm1078_vm0, %v1054_v11 }
 0xe49   :  { %v1356_v52 = vpop.f32.mrb[28].mxu0 }
 0xe4a   :  { %v1128_v53 = vadd.f32 %v1356_v52, %v1225_v48  ;;  %v1119_v54 = vpop.f32.mrb[29].mxu0 }
 0xe4b   :  { %v1120_v18 = vadd.f32 %v1225_v48, %v1119_v54  ;;  %v1357_v55 = vpop.f32.mrb[30].mxu0 }
 0xe4c   :  { %v1136_v56 = vadd.f32 %v1128_v53, %v1737_v62  ;;  %v1131_v51 = vadd.f32 %v1357_v55, %v1225_v48  ;;  %v1122_v57 = vpop.f32.mrb[31].mxu0 }
 0xe4d   :  { %v1134_v0 = vadd.f32 %v1120_v18, %v1731_v59  ;;  %v1123_v3 = vadd.f32 %v1225_v48, %v1122_v57 }
 0xe4e   :  { %v1140_v1 = vmul.f32 %v1136_v56, %v1136_v56  ;;  %v1137_v2 = vadd.f32 %v1131_v51, %v1728_v58 }
 0xe4f   :  { %v1138_v5 = vmul.f32 %v1134_v0, %v1134_v0  ;;  %v1135_v6 = vadd.f32 %v1123_v3, %v1734_v61 }
 0xe50   :  { %v1144_v41 = vmul.f32 %v1140_v1, %v1136_v56  ;;  %v1141_v43 = vmul.f32 %v1137_v2, %v1137_v2 }
 0xe51   :  { %v1142_v45 = vmul.f32 %v1138_v5, %v1134_v0  ;;  %v1139_v4 = vmul.f32 %v1135_v6, %v1135_v6 }
 0xe52   :  { %v1148_v7 = vmul.f32 0.044715, %v1144_v41  ;;  %v1145_v9 = vmul.f32 %v1141_v43, %v1137_v2 }
 0xe53   :  { %v1146_v10 = vmul.f32 0.044715, %v1142_v45  ;;  %v1143_v12 = vmul.f32 %v1139_v4, %v1135_v6 }
 0xe54   :  { %v1152_v62 = vadd.f32 %v1148_v7, %v1136_v56  ;;  %v1149_v13 = vmul.f32 0.044715, %v1145_v9 }
 0xe55   :  { %v1150_v47 = vadd.f32 %v1146_v10, %v1134_v0  ;;  %v1147_v15 = vmul.f32 0.044715, %v1143_v12 }
 0xe56   :  { %v1156_v59 = vmul.f32 0.7978846, %v1152_v62  ;;  %v1153_v19 = vadd.f32 %v1149_v13, %v1137_v2 }
 0xe57   :  { %v1154_v8 = vmul.f32 0.7978846, %v1150_v47  ;;  %v1151_v21 = vadd.f32 %v1147_v15, %v1135_v6 }
 0xe58   :  { %1378 = vtanh.f32 %v1156_v59  ;;  %v1157_v58 = vmul.f32 0.7978846, %v1153_v19 }
 0xe59   :  { %1380 = vtanh.f32 %v1154_v8  ;;  %v1155_v61 = vmul.f32 0.7978846, %v1151_v21 }
 0xe5a   :  { %1382 = vtanh.f32 %v1157_v58 }
 0xe5b   :  { %1384 = vtanh.f32 %v1155_v61 }
 0xe62   :  { %v1379_v16 = vpop.eup %1378 }
 0xe63   :  { %v1381_v22 = vpop.eup %1380  ;;  %v1164_v23 = vadd.f32 1.0, %v1379_v16 }
 0xe64   :  { %v1383_v60 = vpop.eup %1382  ;;  %v1162_v17 = vadd.f32 1.0, %v1381_v22 }
 0xe65   :  { %v1385_v25 = vpop.eup %1384  ;;  %v1168_v63 = vmul.f32 0.5, %v1164_v23  ;;  %v1165_v28 = vadd.f32 1.0, %v1383_v60 }
 0xe66   :  { %v1166_v30 = vmul.f32 0.5, %v1162_v17  ;;  %v1163_v24 = vadd.f32 1.0, %v1385_v25 }
 0xe67   :  { %v1172_v32 = vmul.f32 %v1168_v63, %v1136_v56  ;;  %v1169_v50 = vmul.f32 0.5, %v1165_v28 }
 0xe68   :  { %v1170_v20 = vmul.f32 %v1166_v30, %v1134_v0  ;;  %v1167_v29 = vmul.f32 0.5, %v1163_v24 }
 0xe69   :  { %v1176_v27 = vmul.f32 0.999995, %v1172_v32  ;;  %v1173_v49 = vmul.f32 %v1169_v50, %v1137_v2 }
 0xe6a   :  { %v1174_v31 = vmul.f32 0.999995, %v1170_v20  ;;  %v1171_v26 = vmul.f32 %v1167_v29, %v1135_v6 }
 0xe6b   :  { %1180 = vst.msk [vmem:[%s1786_s9 + $0x10] sm:$0xff] %vm47_vm1, %v1176_v27  ;;  %v1177_v33 = vmul.f32 0.999995, %v1173_v49 }
 0xe6c   :  { %1178 = vst.msk [vmem:[%s1786_s9] sm:$0xff] %vm47_vm1, %v1174_v31  ;;  %v1175_v34 = vmul.f32 0.999995, %v1171_v26 }
 0xe6d   :  { %1181 = vst.msk [vmem:[%s1786_s9 + $0x18] sm:$0xff] %vm47_vm1, %v1177_v33 }
 0xe6e   :  { %1179 = vst.msk [vmem:[%s1786_s9 + $0x8] sm:$0xff] %vm47_vm1, %v1175_v34 }

// kernel: isotropic_vig_forward.9
= control target key start
LH: loop header
LB: loop body
LE: loop exit
PB: predicated region body
PF: predicated region fallthrough
CT: control target
= control target key end

     0   :  { %v29_v30 = vlaneseq  ;;  %s693_s0 = inlined_call_operand.vmem [shape: f32[2,512], index: 0, kind: input, shape index: {}]   ;;  %s694_s1 = inlined_call_operand.vmem [shape: bf16[512,10], index: 1, kind: input, shape index: {}]   ;;  %s695_s2 = inlined_call_operand.vmem [shape: f32[1,10], index: 2, kind: input, shape index: {}]   ;;  %s696_s3 = inlined_call_operand.hbm [shape: f32[2,10], index: 3, kind: output, shape index: {}]  }
   0x1   :  { %v496_v0 = vld [vmem:[%s694_s1 + $0x40] sm:$0xff]   ;;  %v500_v4 = vld [vmem:[%s694_s1 + $0x48] sm:$0xff]   ;;  %v504_v8 = vld [vmem:[%s694_s1 + $0x50] sm:$0xff]  }
   0x2   :  { %v497_v1 = vld [vmem:[%s694_s1 + $0xc0] sm:$0xff]   ;;  %449 = vmatprep.subr.bf16.mxu0 %v496_v0  ;;  %v501_v5 = vld [vmem:[%s694_s1 + $0xc8] sm:$0xff]   ;;  %v505_v9 = vld [vmem:[%s694_s1 + $0xd0] sm:$0xff]  }
   0x3   :  { %v498_v2 = vld [vmem:[%s694_s1] sm:$0xff]   ;;  %471 = vmatprep.subr.bf16.mxu1 %v497_v1  ;;  %v502_v6 = vld [vmem:[%s694_s1 + $0x8] sm:$0xff]   ;;  %v506_v10 = vld [vmem:[%s694_s1 + $0x10] sm:$0xff]  }
   0x4   :  { %v499_v3 = vld [vmem:[%s694_s1 + $0x80] sm:$0xff]   ;;  %450 = vmatpush3.bf16.msra.mxu0 %v498_v2  ;;  %v503_v7 = vld [vmem:[%s694_s1 + $0x88] sm:$0xff]   ;;  %v507_v11 = vld [vmem:[%s694_s1 + $0x90] sm:$0xff]  }
   0x5   :  { %472 = vmatpush3.bf16.msra.mxu1 %v499_v3  ;;  %451 = vmatprep.subr.bf16.mxu0 %v500_v4  ;;  %v508_v12 = vld [vmem:[%s694_s1 + $0x58] sm:$0xff]   ;;  %v512_v16 = vld [vmem:[%s694_s1 + $0x60] sm:$0xff]   ;;  %v516_v20 = vld [vmem:[%s694_s1 + $0x68] sm:$0xff]  }
   0x6   :  { %473 = vmatprep.subr.bf16.mxu1 %v501_v5  ;;  %v509_v13 = vld [vmem:[%s694_s1 + $0xd8] sm:$0xff]   ;;  %v513_v17 = vld [vmem:[%s694_s1 + $0xe0] sm:$0xff]   ;;  %v517_v21 = vld [vmem:[%s694_s1 + $0xe8] sm:$0xff]  }
   0x7   :  { %v510_v14 = vld [vmem:[%s694_s1 + $0x18] sm:$0xff]   ;;  %v514_v18 = vld [vmem:[%s694_s1 + $0x20] sm:$0xff]   ;;  %v518_v22 = vld [vmem:[%s694_s1 + $0x28] sm:$0xff]  }
   0x8   :  { %452 = vmatpush3.bf16.msra.mxu0 %v502_v6  ;;  %v511_v15 = vld [vmem:[%s694_s1 + $0x98] sm:$0xff]   ;;  %v515_v19 = vld [vmem:[%s694_s1 + $0xa0] sm:$0xff]   ;;  %v519_v23 = vld [vmem:[%s694_s1 + $0xa8] sm:$0xff]  }
   0x9   :  { %474 = vmatpush3.bf16.msra.mxu1 %v503_v7  ;;  %453 = vmatprep.subr.bf16.mxu0 %v504_v8  ;;  %v520_v24 = vld [vmem:[%s694_s1 + $0x70] sm:$0xff]   ;;  %v524_v28 = vld [vmem:[%s694_s1 + $0x78] sm:$0xff]   ;;  %v23_v33 = vld [vmem:[%s693_s0] sm:$0xff] }
   0xa   :  { %475 = vmatprep.subr.bf16.mxu1 %v505_v9  ;;  %v521_v25 = vld [vmem:[%s694_s1 + $0xf0] sm:$0xff]   ;;  %v525_v29 = vld [vmem:[%s694_s1 + $0xf8] sm:$0xff]  }
   0xb   :  { %v522_v26 = vld [vmem:[%s694_s1 + $0x30] sm:$0xff]   ;;  %v526_v31 = vld [vmem:[%s694_s1 + $0x38] sm:$0xff]  }
   0xc   :  { %454 = vmatpush3.bf16.msra.mxu0 %v506_v10  ;;  %v523_v27 = vld [vmem:[%s694_s1 + $0xb0] sm:$0xff]   ;;  %v527_v32 = vld [vmem:[%s694_s1 + $0xb8] sm:$0xff]  }
   0xd   :  { %476 = vmatpush3.bf16.msra.mxu1 %v507_v11  ;;  %455 = vmatprep.subr.bf16.mxu0 %v508_v12 }
   0xe   :  { %477 = vmatprep.subr.bf16.mxu1 %v509_v13 }
  0x10   :  { %456 = vmatpush3.bf16.msra.mxu0 %v510_v14 }
  0x11   :  { %478 = vmatpush3.bf16.msra.mxu1 %v511_v15  ;;  %457 = vmatprep.subr.bf16.mxu0 %v512_v16 }
  0x12   :  { %479 = vmatprep.subr.bf16.mxu1 %v513_v17 }
  0x14   :  { %458 = vmatpush3.bf16.msra.mxu0 %v514_v18 }
  0x15   :  { %480 = vmatpush3.bf16.msra.mxu1 %v515_v19  ;;  %459 = vmatprep.subr.bf16.mxu0 %v516_v20 }
  0x16   :  { %481 = vmatprep.subr.bf16.mxu1 %v517_v21 }
  0x18   :  { %460 = vmatpush3.bf16.msra.mxu0 %v518_v22 }
  0x19   :  { %482 = vmatpush3.bf16.msra.mxu1 %v519_v23  ;;  %461 = vmatprep.subr.bf16.mxu0 %v520_v24 }
  0x1a   :  { %483 = vmatprep.subr.bf16.mxu1 %v521_v25 }
  0x1c   :  { %462 = vmatpush3.bf16.msra.mxu0 %v522_v26 }
  0x1d   :  { %484 = vmatpush3.bf16.msra.mxu1 %v523_v27  ;;  %463 = vmatprep.subr.bf16.mxu0 %v524_v28 }
  0x1e   :  { %485 = vmatprep.subr.bf16.mxu1 %v525_v29 }
  0x20   :  { %464 = vmatpush3.bf16.msra.mxu0 %v526_v31 }
  0x21   :  { %8 = vsyncpa [#allocation4], 0  ;;  %486 = vmatpush3.bf16.msra.mxu1 %v527_v32  ;;  %v553_v34 = vmov 1983009808   ;;  %v30_v36 = vshrl.u32 %v29_v30, 7  ;;  %v25_v38 = vcombine.high %v23_v33, %v23_v33  ;;  %vm20_vm0 = vcmask 74752  }
  0x22   :  { %v27_v35 = vunpack.c.l.s4 %v553_v34  ;;  %v554_v48 = vmov 0.0   ;;  %v448_v62 = vld [vmem:[%s695_s2] ss:$0 sm:$0xff]  ;;  %s555_s24 = smov [#allocation3]  }
  0x23   :  { %21 = vst.msk [vmem:[#allocation2] sm:$0x3] %vm20_vm0, %v554_v48  ;;  %s408_s25 = sshll.u32 %s555_s24, 4  ;;  %s409_s25 = int_to_ptr.vmem [resolvable:$true] %s408_s25 }
  0x24   :  { %v28_v37 = vunpack.c.0.s8 %v27_v35  ;;  %s529_s26 = scalar_lea.vmem %s409_s25, 32  ;;  %p534_p1 = scmp.lt.s32.totalorder %s409_s25, %s409_s25 }
  0x25   :  { %p530_p0 = scmp.ne.s32.totalorder %s409_s25, %s529_s26  ;;  %p535_p2 = scmp.lt.s32.totalorder %s529_s26, %s529_s26 }
  0x26   :  { %v31_v39 = vsub.s32 %v28_v37, %v30_v36 }
  0x27   :  { %p536_p3 = por %p535_p2, %p534_p1 }
  0x28   :  { %v32_v40 = vrot.slane %v23_v33, %v31_v39  ;;  %v39_v41 = vrot.slane %v25_v38, %v31_v39 }
  0x29   :  { %p537_p4 = pnand %p536_p3, %p530_p0 }
  0x2a   :  { %v40_v42 = vcombine.high %v32_v40, %v32_v40  ;;  %v41_v43 = vcombine.high %v39_v41, %v39_v41  ;;  %v46_v44 = vpack.c.bf16 %v32_v40, %v32_v40  ;;  %v48_v45 = vpack.c.bf16 %v39_v41, %v39_v41  ;;  %v22_v59 = vld [vmem:[#allocation2] sm:$0x3] }
  0x2c   :  { %v47_v46 = vpack.c.bf16 %v40_v42, %v40_v42  ;;  %v49_v47 = vpack.c.bf16 %v41_v43, %v41_v43 }
  0x2e   :  { %338 = vmatprep.mubr.bf16.mxu0 %v47_v46  ;;  %378 = vmatprep.mubr.bf16.mxu1 %v49_v47 }
  0x2f   :  { %339 = vmatmul.mubr.bf16.vlgmr.msra.gmra.mrb[0].mxu0 %v46_v44  ;;  %379 = vmatmul.mubr.bf16.vlgmr.msra.gmra.mrb[0].mxu1 %v48_v45 }
 0x102   :  { %v465_v49 = vpop.f32.mrb[0].mxu0  ;;  %v487_v50 = vpop.f32.mrb[0].mxu1 }
 0x103   :  { %v466_v51 = vpop.f32.mrb[1].mxu0  ;;  %v488_v52 = vpop.f32.mrb[1].mxu1 }
 0x104   :  { %v467_v53 = vadd.f32 %v466_v51, %v465_v49  ;;  %v489_v54 = vadd.f32 %v488_v52, %v487_v50  ;;  %v468_v55 = vpop.f32.mrb[2].mxu0  ;;  %v490_v56 = vpop.f32.mrb[2].mxu1 }
 0x105   :  { %v469_v57 = vpop.f32.mrb[3].mxu0  ;;  %v491_v58 = vpop.f32.mrb[3].mxu1 }
 0x106   :  { %v381_v60 = vadd.f32 %v489_v54, %v467_v53 }
 0x108   :  { %v386_v61 = vadd.f32 %v381_v60, %v22_v59 }
 0x10a   :  { %388 = vst.msk [vmem:[#allocation2] sm:$0x3] %vm20_vm0, %v386_v61 }
 0x111   :  { %v392_v63 = vld [vmem:[#allocation2] sm:$0x3] }
 0x112   :  { %v400_v0 = vadd.f32 %v448_v62, %v392_v63 }
 0x114   :  { %401 = vst.msk [vmem:[#allocation3] sm:$0x3] %vm20_vm0, %v400_v0 }
 0x115   :  { %540 = shalt.err (!%p537_p4)
}
 0x116   :  { %s541_s29 = scalar_lea.hbm %s696_s3, 32 }
 0x117   :  { %p542_p5 = scmp.ne.s32.totalorder %s696_s3, %s541_s29  ;;  %p545_p6 = scmp.lt.u32.totalorder %s541_s29, %s696_s3 }
 0x119   :  { %p547_p7 = pnand %p545_p6, %p542_p5 }
 0x11b   :  { %550 = shalt.err (!%p547_p7)
}
 0x11c   :  { %411 = dma.vmem_to_hbm [thread:$0]  %s409_s25, 32, %s696_s3, [#allocation4]  }
 0x11d   :  { %551 = dma.done.wait [#allocation4], 32  }
 0x11e   :  { %552 = vsyncadd [#allocation4], 4294967264 }
 0x11f   :  { %415 = vsyncpa [#allocation4], 1 }

</bundles_post_ra>
